<compile_context>
chip_gen: v7x
topology: tpu7x:2x2x1
jax: 0.10.0
libtpu: 0.0.40
codegen_flags: <defaults>
</compile_context>

<pallas_src>
import math

import jax
import jax.numpy as jnp
from jax.experimental import pallas as pl
from jax.experimental.pallas import tpu as pltpu

NEG_SLOPE = 0.05  # nn.LeakyReLU(negative_slope=0.05)
LANE = 128


def _lrelu(x):
    return jnp.where(x > 0, x, NEG_SLOPE * x)


def _round_up(n, m):
    return ((n + m - 1) // m) * m


def _cdiv(a, b):
    return (a + b - 1) // b


# ----------------------------------------------------------------------------
# Kernel: one TM-row slab of the batch per grid step; all weights resident.
# ----------------------------------------------------------------------------
def generic_block_kernel(x_ref,
                         w1_ref, b1_ref, w2_ref, b2_ref,
                         w3_ref, b3_ref, w4_ref, b4_ref,
                         wh_ref, bh_ref,
                         out_ref):
    cdt = w2_ref.dtype  # MXU operand dtype (f32 or bf16)

    def fc_lrelu(h, w_ref, b_ref):
        # f32 accumulation on the MXU; bias add + LeakyReLU on the VPU in f32.
        y = jnp.dot(h, w_ref[...], preferred_element_type=jnp.float32) + b_ref[...]
        return _lrelu(y).astype(cdt)

    # Block.forward: 4 x (Linear + LeakyReLU)
    h = fc_lrelu(x_ref[...], w1_ref, b1_ref)
    h = fc_lrelu(h, w2_ref, b2_ref)
    h = fc_lrelu(h, w3_ref, b3_ref)
    h = fc_lrelu(h, w4_ref, b4_ref)

    # Fused head: columns [0, bc) -> backcast, [bc, bc+fc) -> forecast, rest 0.
    out = jnp.dot(h, wh_ref[...], preferred_element_type=jnp.float32) + bh_ref[...]
    out_ref[...] = out.astype(out_ref.dtype)


# ----------------------------------------------------------------------------
# Wrapper-side parameter padding / fusion (pure layout plumbing, done once).
# ----------------------------------------------------------------------------
def _pad_params(params, backcast_length, forecast_length, compute_dtype):
    (w1, b1, w2, b2, w3, b3, w4, b4, wtb, wtf, wbc, bbc, wfc, bfc) = params
    units = w1.shape[1]

    u_pad = _round_up(units, LANE)
    out_pad = _round_up(backcast_length + forecast_length, LANE)

    def pad_w(w, rows, cols):
        return jnp.pad(w, ((0, rows - w.shape[0]), (0, cols - w.shape[1]))).astype(compute_dtype)

    def pad_b(b, cols):  # biases stay f32 (added post-accumulation)
        return jnp.pad(b, ((0, 0), (0, cols - b.shape[1]))).astype(jnp.float32)

    # fc1 keeps its true K (= backcast_length): no row padding needed.
    w1p = pad_w(w1, w1.shape[0], u_pad); b1p = pad_b(b1, u_pad)
    w2p = pad_w(w2, u_pad, u_pad);       b2p = pad_b(b2, u_pad)
    w3p = pad_w(w3, u_pad, u_pad);       b3p = pad_b(b3, u_pad)
    w4p = pad_w(w4, u_pad, u_pad);       b4p = pad_b(b4, u_pad)

    # Algebraically folded head: valid because there is no bias / nonlinearity
    # between the (bias-free) theta projections and the final Linears, and the
    # thetas themselves are not returned by GenericBlock.forward.
    head_bc = (wtb.astype(jnp.float32) @ wbc.astype(jnp.float32))   # (units, bc)
    head_fc = (wtf.astype(jnp.float32) @ wfc.astype(jnp.float32))   # (units, fc)
    whead = jnp.zeros((u_pad, out_pad), jnp.float32)
    whead = whead.at[:units, :backcast_length].set(head_bc)
    whead = whead.at[:units, backcast_length:backcast_length + forecast_length].set(head_fc)
    whead = whead.astype(compute_dtype)

    bhead = jnp.zeros((1, out_pad), jnp.float32)
    bhead = bhead.at[:, :backcast_length].set(bbc)
    bhead = bhead.at[:, backcast_length:backcast_length + forecast_length].set(bfc)

    return (w1p, b1p, w2p, b2p, w3p, b3p, w4p, b4p, whead, bhead)


def generic_block_forward(x, params, backcast_length, forecast_length, *,
                          tm=1024, compute_dtype=jnp.float32,
                          out_dtype=jnp.float32):
    batch = x.shape[0]
    padded = _pad_params(params, backcast_length, forecast_length, compute_dtype)
    u_pad = padded[2].shape[0]        # padded hidden width
    out_pad = padded[-2].shape[1]     # padded backcast+forecast output width

    # ---- batch tiling ----------------------------------------------------
    # Tiles are multiples of 8 sublanes.  Use at least 2 grid steps when the
    # batch is big enough so the "parallel" axis can shard across v7x's 2 TCs.
    batch8 = _round_up(batch, 8)
    n_steps = max(_cdiv(batch8, max(8, tm)), 2 if batch8 >= 16 else 1)
    tile_m = _round_up(_cdiv(batch8, n_steps), 8)
    batch_pad = tile_m * n_steps

    # Only the batch axis is padded; the feature dim stays backcast_length.
    x_p = jnp.pad(x, ((0, batch_pad - batch), (0, 0))).astype(compute_dtype)

    grid = (n_steps,)
    x_spec = pl.BlockSpec((tile_m, backcast_length), lambda i: (i, 0))
    # Full-array blocks with constant index_map -> weights stay VMEM-resident
    # (no re-DMA across grid steps).
    w_specs = [pl.BlockSpec(p.shape, lambda i: (0, 0)) for p in padded]
    out_spec = pl.BlockSpec((tile_m, out_pad), lambda i: (i, 0))

    # ---- VMEM budget: params (x2 for buffering) + double-buffered x/out
    # tiles + live f32 intermediates + headroom, capped for v7x (64 MiB/TC).
    in_item = jnp.dtype(compute_dtype).itemsize
    out_item = jnp.dtype(out_dtype).itemsize
    param_bytes = sum(int(math.prod(p.shape)) * p.dtype.itemsize for p in padded)
    io_tile_bytes = 2 * (tile_m * backcast_length * in_item + tile_m * out_pad * out_item)
    act_bytes = 6 * tile_m * u_pad * 4
    vmem_limit = int(min(2 * param_bytes + io_tile_bytes + act_bytes + (16 << 20),
                         48 << 20))

    out = pl.pallas_call(
        generic_block_kernel,
        out_shape=jax.ShapeDtypeStruct((batch_pad, out_pad), out_dtype),
        grid=grid,
        in_specs=[x_spec] + w_specs,
        out_specs=out_spec,
        compiler_params=pltpu.CompilerParams(
            dimension_semantics=("parallel",),
            vmem_limit_bytes=vmem_limit),
    )(x_p, *padded)

    backcast = out[:batch, :backcast_length]
    forecast = out[:batch, backcast_length:backcast_length + forecast_length]
    return backcast, forecast


# ----------------------------------------------------------------------------
# Parameter init + plain-JAX reference (PyTorch-equivalent semantics, unfused).
# ----------------------------------------------------------------------------
def init_params(key, units, thetas_dim, backcast_length, forecast_length):
    ks = jax.random.split(key, 14)
    s = 0.1

    def w(k, shape):
        return (s * jax.random.normal(k, shape)).astype(jnp.float32)

    w1 = w(ks[0], (backcast_length, units)); b1 = w(ks[1], (1, units))
    w2 = w(ks[2], (units, units));           b2 = w(ks[3], (1, units))
    w3 = w(ks[4], (units, units));           b3 = w(ks[5], (1, units))
    w4 = w(ks[6], (units, units));           b4 = w(ks[7], (1, units))
    wtb = w(ks[8], (units, thetas_dim))      # thetaBackcastFc (no bias)
    wtf = w(ks[9], (units, thetas_dim))      # thetaForecastFc (no bias, shareThetas=False)
    wbc = w(ks[10], (thetas_dim, backcast_length)); bbc = w(ks[11], (1, backcast_length))
    wfc = w(ks[12], (thetas_dim, forecast_length)); bfc = w(ks[13], (1, forecast_length))
    return (w1, b1, w2, b2, w3, b3, w4, b4, wtb, wtf, wbc, bbc, wfc, bfc)


def reference_forward(x, params):
    (w1, b1, w2, b2, w3, b3, w4, b4, wtb, wtf, wbc, bbc, wfc, bfc) = params
    h = _lrelu(x @ w1 + b1)
    h = _lrelu(h @ w2 + b2)
    h = _lrelu(h @ w3 + b3)
    h = _lrelu(h @ w4 + b4)
    theta_b = h @ wtb
    theta_f = h @ wtf
    return theta_b @ wbc + bbc, theta_f @ wfc + bfc


if __name__ == "__main__":
    # Shapes implied by the module: x is (batch, backcastLength).
    batch = 256            # small, but exercises the >=2-step batch grid
    units = 32
    thetas_dim = 8
    backcast_length = 16
    forecast_length = 8

    key = jax.random.PRNGKey(0)
    kx, kp = jax.random.split(key)
    x = jax.random.normal(kx, (batch, backcast_length), dtype=jnp.float32)
    params = init_params(kp, units, thetas_dim, backcast_length, forecast_length)

    ref_b, ref_f = reference_forward(x, params)

    # f32 operand path (head fusion reassociates the math -> allclose, not bitwise).
    bc32, fc32 = generic_block_forward(x, params, backcast_length, forecast_length,
                                       tm=1024, compute_dtype=jnp.float32)
    bc32 = jax.block_until_ready(bc32)
    fc32 = jax.block_until_ready(fc32)
    assert bc32.shape == (batch, backcast_length)
    assert fc32.shape == (batch, forecast_length)
    assert jnp.allclose(bc32, ref_b, atol=1e-5, rtol=1e-5)
    assert jnp.allclose(fc32, ref_f, atol=1e-5, rtol=1e-5)

    # bf16 operand path (valid on v5e/v6e/v7x MXUs), f32 accumulation + f32
    # bias/LeakyReLU -> relaxed tolerance.
    bc16, fc16 = generic_block_forward(x, params, backcast_length, forecast_length,
                                       tm=1024, compute_dtype=jnp.bfloat16)
    bc16 = jax.block_until_ready(bc16)
    fc16 = jax.block_until_ready(fc16)
    assert jnp.allclose(bc16, ref_b, atol=5e-2, rtol=5e-2)
    assert jnp.allclose(fc16, ref_f, atol=5e-2, rtol=5e-2)

    print("KERNEL_OK")
</pallas_src>

<mosaic_0001>
module attributes {stable_mosaic.version = 11 : i64} {
  func.func @generic_block_kernel(%arg0: i32, %arg1: memref<128x16xf32, #tpu.memory_space<vmem>>, %arg2: memref<16x128xf32, #tpu.memory_space<vmem>>, %arg3: memref<1x128xf32, #tpu.memory_space<vmem>>, %arg4: memref<128x128xf32, #tpu.memory_space<vmem>>, %arg5: memref<1x128xf32, #tpu.memory_space<vmem>>, %arg6: memref<128x128xf32, #tpu.memory_space<vmem>>, %arg7: memref<1x128xf32, #tpu.memory_space<vmem>>, %arg8: memref<128x128xf32, #tpu.memory_space<vmem>>, %arg9: memref<1x128xf32, #tpu.memory_space<vmem>>, %arg10: memref<128x128xf32, #tpu.memory_space<vmem>>, %arg11: memref<1x128xf32, #tpu.memory_space<vmem>>, %arg12: memref<128x128xf32, #tpu.memory_space<vmem>>) attributes {dimension_semantics = [#tpu.dimension_semantics<parallel>], iteration_bounds = array<i64: 2>, scalar_prefetch = 0 : i64, scratch_operands = 0 : i64, tpu.core_type = #tpu.core_type<tc>, window_params = [{transform_indices = @transform_0, window_bounds = array<i64: 128, 16>}, {pipeline_mode = #tpu.pipeline_mode<synchronous>, transform_indices = @transform_1, window_bounds = array<i64: 16, 128>}, {pipeline_mode = #tpu.pipeline_mode<synchronous>, transform_indices = @transform_2, window_bounds = array<i64: 1, 128>}, {pipeline_mode = #tpu.pipeline_mode<synchronous>, transform_indices = @transform_3, window_bounds = array<i64: 128, 128>}, {pipeline_mode = #tpu.pipeline_mode<synchronous>, transform_indices = @transform_4, window_bounds = array<i64: 1, 128>}, {pipeline_mode = #tpu.pipeline_mode<synchronous>, transform_indices = @transform_5, window_bounds = array<i64: 128, 128>}, {pipeline_mode = #tpu.pipeline_mode<synchronous>, transform_indices = @transform_6, window_bounds = array<i64: 1, 128>}, {pipeline_mode = #tpu.pipeline_mode<synchronous>, transform_indices = @transform_7, window_bounds = array<i64: 128, 128>}, {pipeline_mode = #tpu.pipeline_mode<synchronous>, transform_indices = @transform_8, window_bounds = array<i64: 1, 128>}, {pipeline_mode = #tpu.pipeline_mode<synchronous>, transform_indices = @transform_9, window_bounds = array<i64: 128, 128>}, {pipeline_mode = #tpu.pipeline_mode<synchronous>, transform_indices = @transform_10, window_bounds = array<i64: 1, 128>}, {transform_indices = @transform_11, window_bounds = array<i64: 128, 128>}]} {
    %c0 = arith.constant 0 : index
    %c0_0 = arith.constant 0 : index
    %0 = vector.load %arg1[%c0, %c0_0] : memref<128x16xf32, #tpu.memory_space<vmem>>, vector<128x16xf32>
    %c0_1 = arith.constant 0 : index
    %c0_2 = arith.constant 0 : index
    %1 = vector.load %arg2[%c0_1, %c0_2] : memref<16x128xf32, #tpu.memory_space<vmem>>, vector<16x128xf32>
    %cst = arith.constant dense<0.000000e+00> : vector<128x128xf32>
    %2 = tpu.matmul %0, %1, %cst {dimension_numbers = #tpu.dot_dimension_numbers<[1], [0], [0], [1], [0, 0, 1, 1], [], []>} : vector<128x16xf32>, vector<16x128xf32>, vector<128x128xf32> -> vector<128x128xf32>
    %c0_3 = arith.constant 0 : index
    %c0_4 = arith.constant 0 : index
    %3 = vector.load %arg3[%c0_3, %c0_4] : memref<1x128xf32, #tpu.memory_space<vmem>>, vector<1x128xf32>
    %4 = vector.broadcast %3 : vector<1x128xf32> to vector<128x128xf32>
    %5 = arith.addf %2, %4 : vector<128x128xf32>
    %cst_5 = arith.constant 0.000000e+00 : f32
    %6 = vector.broadcast %cst_5 : f32 to vector<128x128xf32>
    %7 = arith.cmpf ogt, %5, %6 : vector<128x128xf32>
    %cst_6 = arith.constant 5.000000e-02 : f32
    %8 = vector.broadcast %cst_6 : f32 to vector<128x128xf32>
    %9 = arith.mulf %8, %5 : vector<128x128xf32>
    %10 = arith.select %7, %5, %9 : vector<128x128xi1>, vector<128x128xf32>
    %c0_7 = arith.constant 0 : index
    %c0_8 = arith.constant 0 : index
    %11 = vector.load %arg4[%c0_7, %c0_8] : memref<128x128xf32, #tpu.memory_space<vmem>>, vector<128x128xf32>
    %cst_9 = arith.constant dense<0.000000e+00> : vector<128x128xf32>
    %12 = tpu.matmul %10, %11, %cst_9 {dimension_numbers = #tpu.dot_dimension_numbers<[1], [0], [0], [1], [0, 0, 1, 1], [], []>} : vector<128x128xf32>, vector<128x128xf32>, vector<128x128xf32> -> vector<128x128xf32>
    %c0_10 = arith.constant 0 : index
    %c0_11 = arith.constant 0 : index
    %13 = vector.load %arg5[%c0_10, %c0_11] : memref<1x128xf32, #tpu.memory_space<vmem>>, vector<1x128xf32>
    %14 = vector.broadcast %13 : vector<1x128xf32> to vector<128x128xf32>
    %15 = arith.addf %12, %14 : vector<128x128xf32>
    %cst_12 = arith.constant 0.000000e+00 : f32
    %16 = vector.broadcast %cst_12 : f32 to vector<128x128xf32>
    %17 = arith.cmpf ogt, %15, %16 : vector<128x128xf32>
    %cst_13 = arith.constant 5.000000e-02 : f32
    %18 = vector.broadcast %cst_13 : f32 to vector<128x128xf32>
    %19 = arith.mulf %18, %15 : vector<128x128xf32>
    %20 = arith.select %17, %15, %19 : vector<128x128xi1>, vector<128x128xf32>
    %c0_14 = arith.constant 0 : index
    %c0_15 = arith.constant 0 : index
    %21 = vector.load %arg6[%c0_14, %c0_15] : memref<128x128xf32, #tpu.memory_space<vmem>>, vector<128x128xf32>
    %cst_16 = arith.constant dense<0.000000e+00> : vector<128x128xf32>
    %22 = tpu.matmul %20, %21, %cst_16 {dimension_numbers = #tpu.dot_dimension_numbers<[1], [0], [0], [1], [0, 0, 1, 1], [], []>} : vector<128x128xf32>, vector<128x128xf32>, vector<128x128xf32> -> vector<128x128xf32>
    %c0_17 = arith.constant 0 : index
    %c0_18 = arith.constant 0 : index
    %23 = vector.load %arg7[%c0_17, %c0_18] : memref<1x128xf32, #tpu.memory_space<vmem>>, vector<1x128xf32>
    %24 = vector.broadcast %23 : vector<1x128xf32> to vector<128x128xf32>
    %25 = arith.addf %22, %24 : vector<128x128xf32>
    %cst_19 = arith.constant 0.000000e+00 : f32
    %26 = vector.broadcast %cst_19 : f32 to vector<128x128xf32>
    %27 = arith.cmpf ogt, %25, %26 : vector<128x128xf32>
    %cst_20 = arith.constant 5.000000e-02 : f32
    %28 = vector.broadcast %cst_20 : f32 to vector<128x128xf32>
    %29 = arith.mulf %28, %25 : vector<128x128xf32>
    %30 = arith.select %27, %25, %29 : vector<128x128xi1>, vector<128x128xf32>
    %c0_21 = arith.constant 0 : index
    %c0_22 = arith.constant 0 : index
    %31 = vector.load %arg8[%c0_21, %c0_22] : memref<128x128xf32, #tpu.memory_space<vmem>>, vector<128x128xf32>
    %cst_23 = arith.constant dense<0.000000e+00> : vector<128x128xf32>
    %32 = tpu.matmul %30, %31, %cst_23 {dimension_numbers = #tpu.dot_dimension_numbers<[1], [0], [0], [1], [0, 0, 1, 1], [], []>} : vector<128x128xf32>, vector<128x128xf32>, vector<128x128xf32> -> vector<128x128xf32>
    %c0_24 = arith.constant 0 : index
    %c0_25 = arith.constant 0 : index
    %33 = vector.load %arg9[%c0_24, %c0_25] : memref<1x128xf32, #tpu.memory_space<vmem>>, vector<1x128xf32>
    %34 = vector.broadcast %33 : vector<1x128xf32> to vector<128x128xf32>
    %35 = arith.addf %32, %34 : vector<128x128xf32>
    %cst_26 = arith.constant 0.000000e+00 : f32
    %36 = vector.broadcast %cst_26 : f32 to vector<128x128xf32>
    %37 = arith.cmpf ogt, %35, %36 : vector<128x128xf32>
    %cst_27 = arith.constant 5.000000e-02 : f32
    %38 = vector.broadcast %cst_27 : f32 to vector<128x128xf32>
    %39 = arith.mulf %38, %35 : vector<128x128xf32>
    %40 = arith.select %37, %35, %39 : vector<128x128xi1>, vector<128x128xf32>
    %c0_28 = arith.constant 0 : index
    %c0_29 = arith.constant 0 : index
    %41 = vector.load %arg10[%c0_28, %c0_29] : memref<128x128xf32, #tpu.memory_space<vmem>>, vector<128x128xf32>
    %cst_30 = arith.constant dense<0.000000e+00> : vector<128x128xf32>
    %42 = tpu.matmul %40, %41, %cst_30 {dimension_numbers = #tpu.dot_dimension_numbers<[1], [0], [0], [1], [0, 0, 1, 1], [], []>} : vector<128x128xf32>, vector<128x128xf32>, vector<128x128xf32> -> vector<128x128xf32>
    %c0_31 = arith.constant 0 : index
    %c0_32 = arith.constant 0 : index
    %43 = vector.load %arg11[%c0_31, %c0_32] : memref<1x128xf32, #tpu.memory_space<vmem>>, vector<1x128xf32>
    %44 = vector.broadcast %43 : vector<1x128xf32> to vector<128x128xf32>
    %45 = arith.addf %42, %44 : vector<128x128xf32>
    %c0_33 = arith.constant 0 : index
    %c0_34 = arith.constant 0 : index
    %46 = vector.load %arg12[%c0_33, %c0_34] : memref<128x128xf32, #tpu.memory_space<vmem>>, vector<128x128xf32>
    tpu.vector_store %arg12[%c0_33, %c0_34], %45 {strides = array<i32>} : memref<128x128xf32, #tpu.memory_space<vmem>>, vector<128x128xf32>,
    return
  }
  func.func @transform_0(%arg0: i32) -> (i32, i32) {
    %c0_i32 = arith.constant 0 : i32
    %c0_i32_0 = arith.constant 0 : i32
    return %arg0, %c0_i32 : i32, i32
  }
  func.func @transform_1(%arg0: i32) -> (i32, i32) {
    %c0_i32 = arith.constant 0 : i32
    %c0_i32_0 = arith.constant 0 : i32
    %c0_i32_1 = arith.constant 0 : i32
    return %c0_i32, %c0_i32_0 : i32, i32
  }
  func.func @transform_2(%arg0: i32) -> (i32, i32) {
    %c0_i32 = arith.constant 0 : i32
    %c0_i32_0 = arith.constant 0 : i32
    %c0_i32_1 = arith.constant 0 : i32
    return %c0_i32, %c0_i32_0 : i32, i32
  }
  func.func @transform_3(%arg0: i32) -> (i32, i32) {
    %c0_i32 = arith.constant 0 : i32
    %c0_i32_0 = arith.constant 0 : i32
    %c0_i32_1 = arith.constant 0 : i32
    return %c0_i32, %c0_i32_0 : i32, i32
  }
  func.func @transform_4(%arg0: i32) -> (i32, i32) {
    %c0_i32 = arith.constant 0 : i32
    %c0_i32_0 = arith.constant 0 : i32
    %c0_i32_1 = arith.constant 0 : i32
    return %c0_i32, %c0_i32_0 : i32, i32
  }
  func.func @transform_5(%arg0: i32) -> (i32, i32) {
    %c0_i32 = arith.constant 0 : i32
    %c0_i32_0 = arith.constant 0 : i32
    %c0_i32_1 = arith.constant 0 : i32
    return %c0_i32, %c0_i32_0 : i32, i32
  }
  func.func @transform_6(%arg0: i32) -> (i32, i32) {
    %c0_i32 = arith.constant 0 : i32
    %c0_i32_0 = arith.constant 0 : i32
    %c0_i32_1 = arith.constant 0 : i32
    return %c0_i32, %c0_i32_0 : i32, i32
  }
  func.func @transform_7(%arg0: i32) -> (i32, i32) {
    %c0_i32 = arith.constant 0 : i32
    %c0_i32_0 = arith.constant 0 : i32
    %c0_i32_1 = arith.constant 0 : i32
    return %c0_i32, %c0_i32_0 : i32, i32
  }
  func.func @transform_8(%arg0: i32) -> (i32, i32) {
    %c0_i32 = arith.constant 0 : i32
    %c0_i32_0 = arith.constant 0 : i32
    %c0_i32_1 = arith.constant 0 : i32
    return %c0_i32, %c0_i32_0 : i32, i32
  }
  func.func @transform_9(%arg0: i32) -> (i32, i32) {
    %c0_i32 = arith.constant 0 : i32
    %c0_i32_0 = arith.constant 0 : i32
    %c0_i32_1 = arith.constant 0 : i32
    return %c0_i32, %c0_i32_0 : i32, i32
  }
  func.func @transform_10(%arg0: i32) -> (i32, i32) {
    %c0_i32 = arith.constant 0 : i32
    %c0_i32_0 = arith.constant 0 : i32
    %c0_i32_1 = arith.constant 0 : i32
    return %c0_i32, %c0_i32_0 : i32, i32
  }
  func.func @transform_11(%arg0: i32) -> (i32, i32) {
    %c0_i32 = arith.constant 0 : i32
    %c0_i32_0 = arith.constant 0 : i32
    return %arg0, %c0_i32 : i32, i32
  }
}

</mosaic_0001>

<bundles_post_ra>
// kernel: tpu_custom_call.1
= control target key start
LH: loop header
LB: loop body
LE: loop exit
PB: predicated region body
PF: predicated region fallthrough
CT: control target
= control target key end

     0   :  { %16 = vsyncpa [#allocation3], 0  ;;  %s2862_s0 = inlined_call_operand.vmem [shape: f32[256,16], index: 0, kind: input, shape index: {}]   ;;  %s2863_s1 = inlined_call_operand.vmem [shape: f32[16,128], index: 1, kind: input, shape index: {}]   ;;  %s2864_s2 = inlined_call_operand.vmem [shape: f32[1,128], index: 2, kind: input, shape index: {}]   ;;  %s2865_s3 = inlined_call_operand.vmem [shape: f32[128,128], index: 3, kind: input, shape index: {}]   ;;  %s2866_s4 = inlined_call_operand.vmem [shape: f32[1,128], index: 4, kind: input, shape index: {}]   ;;  %s2867_s5 = inlined_call_operand.vmem [shape: f32[128,128], index: 5, kind: input, shape index: {}]   ;;  %s2868_s6 = inlined_call_operand.vmem [shape: f32[1,128], index: 6, kind: input, shape index: {}]   ;;  %s2869_s7 = inlined_call_operand.hbm [shape: f32[128,128], index: 7, kind: input, shape index: {}]   ;;  %s2870_s8 = inlined_call_operand.vmem [shape: f32[1,128], index: 8, kind: input, shape index: {}]   ;;  %s2871_s9 = inlined_call_operand.hbm [shape: f32[128,128], index: 9, kind: input, shape index: {}]   ;;  %s2872_s10 = inlined_call_operand.vmem [shape: f32[1,128], index: 10, kind: input, shape index: {}]   ;;  %s2873_s11 = inlined_call_operand.hbm [shape: f32[256,128], index: 11, kind: output, shape index: {}]  }
   0x1   :  { %17 = vsyncpa [#allocation6], 0 }
   0x2   :  { %18 = vsyncpa [#allocation4], 0 }
   0x3   :  { %20 = vsyncpa [#allocation4 + $0x1], 0  ;;  %s2442_s17 = smov 0   ;;  %s2444_s18 = smov 0  }
   0x4   :  { %s2446_s19 = smov 0   ;;  %s2448_s20 = smov 0  }
   0x5 LB: > { %2882 = sst [smem:[#allocation11_spill]] %s2361_s17  ;;  %s2463_s21 = sadd.s32 4294967295, %s2373_s20   ;;  %s2373_s20 = sphi %s2448_s20, %s2900_s20   ;;  %s2369_s19 = sphi %s2446_s19, %s2905_s19   ;;  %s2365_s18 = sphi %s2444_s18, %s2904_s18   ;;  %s2361_s17 = sphi %s2442_s17, %s2903_s17  }
   0x6   : > { %2883 = sst [smem:[#allocation12_spill]] %s2369_s19  ;;  %s1615_s22 = sadd.s32 4294967294, %s2373_s20  }
   0x7   : > { %s2467_s23 = sadd.s32 1, %s2373_s20   ;;  %s269_s24 = sadd.s32 1, %s2369_s19 }
   0x8   : > { %2884 = sst [smem:[#allocation13_spill]] %s2467_s23  ;;  %s266_s25 = ssub.s32 %s2373_s20, %s2467_s23 }
   0x9   : > { %p279_p0 = scmp.ne.s32.totalorder %s2369_s19, %s2365_s18  ;;  %p267_p1 = scmp.eq.s32.totalorder %s266_s25, 0 }
   0xa   : > { %p280_p2 = scmp.eq.s32.totalorder %s2463_s21, 1  ;;  %p285_p3 = scmp.ne.s32.totalorder %s2365_s18, %s2361_s17 }
   0xb   : > { %p286_p4 = scmp.eq.s32.totalorder %s1615_s22, 1  ;;  %p1616_p7 = scmp.ge.s32.totalorder %s2373_s20, 1 }
   0xc   : > { %s2478_s26 = scalar_select %p267_p1, %s2369_s19, %s269_s24  }
   0xd   : > { %p2480_p5 = por %p280_p2, %p279_p0  ;;  %p2484_p6 = por %p286_p4, %p285_p3 }
   0xe   : > { %2885 = sst [smem:[#allocation14_spill]] %s2478_s26  ;;  %p293_p8 = scmp.lt.s32.totalorder %s2373_s20, 3 }
   0xf   : > { %s2886_s27 = scalar_select %p2480_p5, 1, 0 }
  0x10   : > { %s2887_s28 = scalar_select %p2484_p6, 1, 0 }
  0x11   : > { %p2875_p9 = scmp.eq.s32.totalorder %s2463_s21, 0  ;;  %p2491_p10 = pnand %p1616_p7, %p293_p8 }
  0x12   : > { %2888 = sst [smem:[#allocation15_spill]] %s2887_s28  ;;  %s2375_s30 = smov [#allocation2]  }
  0x13   : > { %s2889_s29 = scalar_select %p2491_p10, 1, 0 }
  0x14   : > { %s323_s12 = sshll.u32 %s2375_s30, 4  ;;  %p2193_p11 = pneg %p2491_p10  ;;  %s324_s12 = int_to_ptr.vmem [resolvable:$true] %s323_s12 }
  0x15   : > { %s2376_s14 = smov [#allocation5]   ;;  %s2247_s24 = scalar_lea.hbm %s2869_s7, 2048 }
  0x16   : > { %p2499_p12 = pnand %p2875_p9, %p2193_p11  ;;  %s339_s15 = sshll.u32 %s2376_s14, 4  ;;  %s2503_s15 = int_to_ptr.vmem [resolvable:$true] %s339_s15 }
  0x17   : > { %p2248_p13 = scmp.ne.s32.totalorder %s2869_s7, %s2247_s24  ;;  %p2254_p3 = scmp.lt.u32.totalorder %s2247_s24, %s2869_s7 }
  0x18   : > { %p2249_p0 = pneg %p2499_p12 }
  0x1a   : > { %p2250_p1 = pnand %p2249_p0, %p2248_p13 }
  0x1c   : > { %p2251_p2 = pneg %p2250_p1 }
  0x1e   : > { %p2256_p4 = pnand %p2254_p3, %p2251_p2 }
  0x20   : > { %2259 = shalt.err (!%p2256_p4)
}
  0x21   : > { %s2260_s14 = scalar_lea.vmem %s324_s12, 2048  ;;  %p2268_p9 = scmp.lt.s32.totalorder %s324_s12, %s324_s12 }
  0x22   : > { %p2261_p7 = scmp.ne.s32.totalorder %s324_s12, %s2260_s14  ;;  %p2269_p6 = scmp.lt.s32.totalorder %s2260_s14, %s2260_s14 }
  0x24   : > { %p2263_p8 = pnand %p2261_p7, %p2249_p0  ;;  %p2270_p5 = por %p2269_p6, %p2268_p9 }
  0x26   : > { %p2264_p11 = pneg %p2263_p8 }
  0x28   : > { %p2271_p10 = pnand %p2270_p5, %p2264_p11 }
  0x2a   : > { %2274 = shalt.err (!%p2271_p10)
}
  0x2b   : > { %s2377_s16 = smov 128   ;;  %s2378_s22 = smov 8  }
  0x2c   : > { %2196 = dma.hbm_to_vmem [thread:$0]  (!%p2499_p12), %s2869_s7, 2048, %s324_s12, [#allocation3], %s2377_s16, %s2377_s16, %s2378_s22  }
  0x2d   : > { %s2275_s30 = scalar_lea.hbm %s2871_s9, 2048 }
  0x2e   : > { %p2276_p13 = scmp.ne.s32.totalorder %s2871_s9, %s2275_s30  ;;  %p2282_p9 = scmp.lt.u32.totalorder %s2275_s30, %s2871_s9 }
  0x30   : > { %p2278_p5 = pnand %p2276_p13, %p2249_p0 }
  0x32   : > { %p2279_p6 = pneg %p2278_p5 }
  0x34   : > { %p2284_p10 = pnand %p2282_p9, %p2279_p6 }
  0x36   : > { %2287 = shalt.err (!%p2284_p10)
}
  0x37   : > { %s2288_s12 = scalar_lea.vmem %s2503_s15, 2048  ;;  %p2296_p4 = scmp.lt.s32.totalorder %s2503_s15, %s2503_s15 }
  0x38   : > { %p2289_p1 = scmp.ne.s32.totalorder %s2503_s15, %s2288_s12  ;;  %p2297_p7 = scmp.lt.s32.totalorder %s2288_s12, %s2288_s12 }
  0x3a   : > { %p2291_p2 = pnand %p2289_p1, %p2249_p0  ;;  %p2298_p8 = por %p2297_p7, %p2296_p4 }
  0x3c   : > { %p2292_p3 = pneg %p2291_p2 }
  0x3e   : > { %p2299_p11 = pnand %p2298_p8, %p2292_p3 }
  0x40   : > { %2302 = shalt.err (!%p2299_p11)
}
  0x41   : > { %2199 = dma.hbm_to_vmem [thread:$0]  (!%p2499_p12), %s2871_s9, 2048, %s2503_s15, [#allocation6], %s2377_s16, %s2377_s16, %s2378_s22  }
  0x42   : > { %p2891_p13 = scmp.ne.s32.totalorder %s2889_s29, 0 }
  0x43   : > { %p2892_p5 = scmp.eq.s32.totalorder (!%p2891_p13), %s2463_s21, 0 }
  0x44   : > { %367 = sbr.rel (%p2891_p13) target bundleno = 1222 (0x4c6), region = 64 }
  0x4b   : > { %2348 = dma.done.wait (%p2892_p5), [#allocation3], 2048   ;;  %p2893_p0 = pmov %p2892_p5 }
  0x4d   : > { %2350 = vsyncadd (%p2893_p0), [#allocation3], 4294965248  ;;  %p2894_p6 = pmov %p2893_p0 }
  0x4e   : > { %p2895_p9 = pmov %p2893_p0 }
  0x4f   : > { %2352 = dma.done.wait (%p2894_p6), [#allocation6], 2048  }
  0x50   : > { %2354 = vsyncadd (%p2895_p9), [#allocation6], 4294965248  ;;  %s1624_s28 = sshll.u32 %s2463_s21, 4  ;;  %vm443_vm0 = vcmask 130048   ;;  %v434_v0 = vld [vmem:[%s2863_s1] sm:$0xff]  ;;  %v435_v1 = vld [vmem:[%s2863_s1 + $0x8] sm:$0xff] }
  0x51   : > { %p412_p10 = scmp.lt.s32.totalorder %s1624_s28, 31  ;;  %v2051_v3 = vpack.c.bf16 %v435_v1, %v434_v0  ;;  %v685_v6 = vld [vmem:[%s2865_s3] sm:$0xff]  ;;  %v686_v7 = vld [vmem:[%s2865_s3 + $0x8] sm:$0xff]  ;;  %v687_v8 = vld [vmem:[%s2865_s3 + $0x10] sm:$0xff]  ;;  %s408_s24 = sand.u32 1, %s2365_s18  }
  0x52   : > { %v2055_v9 = vpack.c.bf16 %v686_v7, %v685_v6  ;;  %v688_v10 = vld [vmem:[%s2865_s3 + $0x18] sm:$0xff]  ;;  %v689_v13 = vld [vmem:[%s2865_s3 + $0x20] sm:$0xff]  ;;  %v690_v14 = vld [vmem:[%s2865_s3 + $0x28] sm:$0xff]  ;;  %s1623_s25 = sshll.u32 %s408_s24, 7  ;;  %p2896_p1 = scmp.ne.s32.totalorder %s2886_s27, 0 }
  0x53   : > { %s2907_s28 = smov (!%p412_p10, %s1624_s28), 31  ;;  %2052 = vmatprep.subr.bf16.mxu0 %v2051_v3  ;;  %v2059_v12 = vpack.c.bf16 %v688_v10, %v687_v8  ;;  %v2063_v16 = vpack.c.bf16 %v690_v14, %v689_v13  ;;  %v691_v18 = vld [vmem:[%s2865_s3 + $0x30] sm:$0xff]  ;;  %v692_v19 = vld [vmem:[%s2865_s3 + $0x38] sm:$0xff]  ;;  %v693_v23 = vld [vmem:[%s2865_s3 + $0x40] sm:$0xff]  ;;  %s2792_s12 = scalar_lea.vmem [#allocation7], %s1623_s25 }
  0x54   : > { %s1625_s13 = sshll.u32 %s2907_s28, 3  ;;  %2054 = vmatpush3.bf16.msra.mxu0 %v2051_v3  ;;  %2056 = vmatprep.subr.bf16.mxu1 %v2055_v9  ;;  %v2067_v21 = vpack.c.bf16 %v692_v19, %v691_v18  ;;  %v694_v24 = vld [vmem:[%s2865_s3 + $0x48] sm:$0xff]  ;;  %v695_v28 = vld [vmem:[%s2865_s3 + $0x50] sm:$0xff]  ;;  %v696_v29 = vld [vmem:[%s2865_s3 + $0x58] sm:$0xff]  ;;  %s1531_s17 = sshll.u32 %s2792_s12, 4  ;;  %s2815_s17 = int_to_ptr.vmem [resolvable:$true] %s1531_s17 }
  0x55   : > { %s2566_s16 = scalar_lea.vmem %s2862_s0, %s1625_s13  ;;  %2058 = vmatpush3.bf16.msra.mxu1 %v2055_v9  ;;  %v2071_v26 = vpack.c.bf16 %v694_v24, %v693_v23  ;;  %v2075_v31 = vpack.c.bf16 %v696_v29, %v695_v28  ;;  %v697_v37 = vld [vmem:[%s2865_s3 + $0x60] sm:$0xff]  ;;  %v698_v38 = vld [vmem:[%s2865_s3 + $0x68] sm:$0xff]  ;;  %v699_v40 = vld [vmem:[%s2865_s3 + $0x70] sm:$0xff]  ;;  %s2303_s29 = scalar_lea.vmem %s2815_s17, 2048 }
  0x56   : > { %v418_v2 = vld [vmem:[%s2566_s16] sm:$0xff]  ;;  %v419_v4 = vld [vmem:[%s2566_s16 + $0x8] sm:$0xff]  ;;  %v420_v5 = vld [vmem:[%s2566_s16 + $0x10] sm:$0xff]  ;;  %2060 = vmatprep.subr.bf16.mxu1 %v2059_v12  ;;  %v2079_v39 = vpack.c.bf16 %v698_v38, %v697_v37  ;;  %p2304_p12 = scmp.ne.s32.totalorder %s2815_s17, %s2303_s29  ;;  %s2379_s15 = smov [#allocation7]  }
  0x57   : > { %1803 = vmatprep.mubr.msk.f32.mxu0 %vm443_vm0, %v418_v2  ;;  %v421_v11 = vld [vmem:[%s2566_s16 + $0x18] sm:$0xff]  ;;  %v422_v15 = vld [vmem:[%s2566_s16 + $0x20] sm:$0xff]  ;;  %v423_v17 = vld [vmem:[%s2566_s16 + $0x28] sm:$0xff]  ;;  %s2307_s22 = sshll.u32 %s2379_s15, 4  ;;  %s2308_s22 = int_to_ptr.vmem [resolvable:$false] %s2307_s22 }
  0x58   : > { %1804 = vmatmul.mubr.msk.f32.vlgmr.msra.gmra.mrb[0].mxu0 %vm443_vm0, %v419_v4  ;;  %v424_v20 = vld [vmem:[%s2566_s16 + $0x30] sm:$0xff]  ;;  %v425_v22 = vld [vmem:[%s2566_s16 + $0x38] sm:$0xff]  ;;  %v426_v25 = vld [vmem:[%s2566_s16 + $0x40] sm:$0xff]  ;;  %p2305_p2 = pnand %p2304_p12, %p2896_p1  ;;  %s2309_s19 = scalar_lea.vmem %s2308_s22, 4096 }
  0x59   : > { %1806 = vmatprep.mubr.msk.f32.mxu0 %vm443_vm0, %v420_v5  ;;  %2062 = vmatpush3.bf16.msra.mxu1 %v2059_v12  ;;  %v427_v27 = vld [vmem:[%s2566_s16 + $0x48] sm:$0xff]  ;;  %v428_v30 = vld [vmem:[%s2566_s16 + $0x50] sm:$0xff]  ;;  %v429_v32 = vld [vmem:[%s2566_s16 + $0x58] sm:$0xff]  ;;  %p2310_p4 = scmp.lt.s32.totalorder %s2815_s17, %s2308_s22  ;;  %p2311_p7 = scmp.lt.s32.totalorder %s2309_s19, %s2303_s29 }
  0x5a   : > { %2064 = vmatprep.subr.bf16.mxu1 %v2063_v16  ;;  %v430_v33 = vld [vmem:[%s2566_s16 + $0x60] sm:$0xff]  ;;  %v431_v34 = vld [vmem:[%s2566_s16 + $0x68] sm:$0xff]  ;;  %v432_v35 = vld [vmem:[%s2566_s16 + $0x70] sm:$0xff]  ;;  %p2306_p3 = pneg %p2305_p2 }
  0x5b   : > { %v433_v36 = vld [vmem:[%s2566_s16 + $0x78] sm:$0xff]  ;;  %v901_v43 = vld [vmem:[%s2867_s5] sm:$0xff]  ;;  %v902_v44 = vld [vmem:[%s2867_s5 + $0x8] sm:$0xff]  ;;  %s1652_s16 = sshll.u32 %s2463_s21, 11  ;;  %s2821_s21 = scalar_lea.sflag [#allocation4], %s408_s24 }
  0x5c   : > { %1807 = vmatmul.mubr.msk.f32.gmra.mrb[2].mxu0 %vm443_vm0, %v421_v11  ;;  %v700_v41 = vld [vmem:[%s2865_s3 + $0x78] sm:$0xff]  ;;  %v903_v45 = vld [vmem:[%s2867_s5 + $0x10] sm:$0xff]  ;;  %v2087_v46 = vpack.c.bf16 %v902_v44, %v901_v43  ;;  %v905_v49 = vld [vmem:[%s2867_s5 + $0x20] sm:$0xff]  ;;  %s2813_s13 = scalar_lea.hbm %s2873_s11, %s1652_s16  ;;  %p2312_p8 = por %p2311_p7, %p2310_p4 }
  0x5d   : > { %1809 = vmatprep.mubr.msk.f32.mxu0 %vm443_vm0, %v422_v15  ;;  %2066 = vmatpush3.bf16.msra.mxu1 %v2063_v16  ;;  %v2083_v42 = vpack.c.bf16 %v700_v41, %v699_v40  ;;  %v904_v47 = vld [vmem:[%s2867_s5 + $0x18] sm:$0xff]  ;;  %v906_v50 = vld [vmem:[%s2867_s5 + $0x28] sm:$0xff]  ;;  %v907_v52 = vld [vmem:[%s2867_s5 + $0x30] sm:$0xff] }
  0x5e   : > { %2068 = vmatprep.subr.bf16.mxu1 %v2067_v21  ;;  %v2091_v48 = vpack.c.bf16 %v904_v47, %v903_v45  ;;  %2088 = vmatprep.subr.bf16.mxu0 %v2087_v46  ;;  %v2095_v51 = vpack.c.bf16 %v906_v50, %v905_v49  ;;  %v908_v53 = vld [vmem:[%s2867_s5 + $0x38] sm:$0xff]  ;;  %v909_v55 = vld [vmem:[%s2867_s5 + $0x40] sm:$0xff]  ;;  %v910_v56 = vld [vmem:[%s2867_s5 + $0x48] sm:$0xff]  ;;  %p2313_p11 = pnand %p2312_p8, %p2306_p3 }
  0x5f   : > { %2090 = vmatpush3.bf16.msra.mxu0 %v2087_v46  ;;  %v2099_v54 = vpack.c.bf16 %v908_v53, %v907_v52  ;;  %v2103_v57 = vpack.c.bf16 %v910_v56, %v909_v55  ;;  %v911_v58 = vld [vmem:[%s2867_s5 + $0x50] sm:$0xff]  ;;  %v912_v59 = vld [vmem:[%s2867_s5 + $0x58] sm:$0xff]  ;;  %v913_v61 = vld [vmem:[%s2867_s5 + $0x60] sm:$0xff] }
  0x60   : > { %1810 = vmatmul.mubr.msk.f32.gmra.mrb[4].mxu0 %vm443_vm0, %v423_v17  ;;  %2092 = vmatprep.subr.bf16.mxu0 %v2091_v48  ;;  %v2107_v60 = vpack.c.bf16 %v912_v59, %v911_v58  ;;  %v914_v62 = vld [vmem:[%s2867_s5 + $0x68] sm:$0xff]  ;;  %v2699_v0 = vld [vmem:[%s2864_s2] ss:$0 sm:$0xff] }
  0x61   : > { %1812 = vmatprep.mubr.msk.f32.mxu0 %vm443_vm0, %v424_v20  ;;  %2070 = vmatpush3.bf16.msra.mxu1 %v2067_v21  ;;  %v2111_v63 = vpack.c.bf16 %v914_v62, %v913_v61 }
  0x62   : > { %2072 = vmatprep.subr.bf16.mxu1 %v2071_v26 }
  0x63   : > { %2094 = vmatpush3.bf16.msra.mxu0 %v2091_v48 }
  0x64   : > { %1813 = vmatmul.mubr.msk.f32.gmra.mrb[6].mxu0 %vm443_vm0, %v425_v22  ;;  %2096 = vmatprep.subr.bf16.mxu0 %v2095_v51 }
  0x65   : > { %1815 = vmatprep.mubr.msk.f32.mxu0 %vm443_vm0, %v426_v25  ;;  %2074 = vmatpush3.bf16.msra.mxu1 %v2071_v26 }
  0x66   : > { %2076 = vmatprep.subr.bf16.mxu1 %v2075_v31 }
  0x67   : > { %2098 = vmatpush3.bf16.msra.mxu0 %v2095_v51 }
  0x68   : > { %1816 = vmatmul.mubr.msk.f32.gmra.mrb[8].mxu0 %vm443_vm0, %v427_v27  ;;  %2100 = vmatprep.subr.bf16.mxu0 %v2099_v54 }
  0x69   : > { %1818 = vmatprep.mubr.msk.f32.mxu0 %vm443_vm0, %v428_v30  ;;  %2078 = vmatpush3.bf16.msra.mxu1 %v2075_v31 }
  0x6a   : > { %2080 = vmatprep.subr.bf16.mxu1 %v2079_v39 }
  0x6b   : > { %2102 = vmatpush3.bf16.msra.mxu0 %v2099_v54 }
  0x6c   : > { %1819 = vmatmul.mubr.msk.f32.gmra.mrb[10].mxu0 %vm443_vm0, %v429_v32  ;;  %2104 = vmatprep.subr.bf16.mxu0 %v2103_v57 }
  0x6d   : > { %1821 = vmatprep.mubr.msk.f32.mxu0 %vm443_vm0, %v430_v33  ;;  %2082 = vmatpush3.bf16.msra.mxu1 %v2079_v39 }
  0x6e   : > { %2084 = vmatprep.subr.bf16.mxu1 %v2083_v42 }
  0x6f   : > { %2106 = vmatpush3.bf16.msra.mxu0 %v2103_v57 }
  0x70   : > { %1822 = vmatmul.mubr.msk.f32.gmra.mrb[12].mxu0 %vm443_vm0, %v431_v34  ;;  %2108 = vmatprep.subr.bf16.mxu0 %v2107_v60 }
  0x71   : > { %1824 = vmatprep.mubr.msk.f32.mxu0 %vm443_vm0, %v432_v35  ;;  %2086 = vmatpush3.bf16.msra.mxu1 %v2083_v42 }
  0x73   : > { %2110 = vmatpush3.bf16.msra.mxu0 %v2107_v60 }
  0x74   : > { %1825 = vmatmul.mubr.msk.f32.gmra.mrb[14].mxu0 %vm443_vm0, %v433_v36  ;;  %2112 = vmatprep.subr.bf16.mxu0 %v2111_v63 }
  0x77   : > { %2114 = vmatpush3.bf16.msra.mxu0 %v2111_v63 }
 0x12b   : > { %v1805_v1 = vpop.f32.mrb[0].mxu0 }
 0x12c   : > { %v564_v2 = vadd.f32 %v1805_v1, %v2699_v0  ;;  %v558_v3 = vpop.f32.mrb[1].mxu0 }
 0x12d   : > { %v559_v4 = vadd.f32 %v2699_v0, %v558_v3 }
 0x12e   : > { %v654_v5 = vmul.f32 0.05, %v564_v2  ;;  %vm638_vm2 = vcmp.gt.f32.partialorder %v564_v2, 0.0 }
 0x12f   : > { %v1808_v6 = vpop.f32.mrb[2].mxu0  ;;  %vm637_vm1 = vcmp.gt.f32.partialorder %v559_v4, 0.0  ;;  %v653_v7 = vmul.f32 0.05, %v559_v4 }
 0x130   : > { %v574_v8 = vadd.f32 %v1808_v6, %v2699_v0  ;;  %v568_v9 = vpop.f32.mrb[3].mxu0  ;;  %v670_v13 = vsel %vm638_vm2, %v564_v2, %v654_v5  ;;  %v915_v2 = vld [vmem:[%s2867_s5 + $0x70] sm:$0xff]  ;;  %v1118_v5 = vld [vmem:[#allocation2 + $0x8] sm:$0xff] }
 0x131   : > { %v569_v10 = vadd.f32 %v2699_v0, %v568_v9  ;;  %v669_v11 = vsel %vm637_vm1, %v559_v4, %v653_v7  ;;  %v1117_v4 = vld [vmem:[#allocation2] sm:$0xff]  ;;  %v1119_v6 = vld [vmem:[#allocation2 + $0x10] sm:$0xff] }
 0x132   : > { %v656_v12 = vmul.f32 0.05, %v574_v8  ;;  %1859 = vmatprep.mubr.f32.mxu1 %v669_v11  ;;  %vm640_vm4 = vcmp.gt.f32.partialorder %v574_v8, 0.0  ;;  %v2119_v7 = vpack.c.bf16 %v1118_v5, %v1117_v4  ;;  %v1122_v11 = vld [vmem:[#allocation2 + $0x28] sm:$0xff] }
 0x133   : > { %v655_v14 = vmul.f32 0.05, %v569_v10  ;;  %v1811_v15 = vpop.f32.mrb[4].mxu0  ;;  %1860 = vmatmul.mubr.f32.vlgmr.msra.gmra.mrb[0].mxu1 %v670_v13  ;;  %vm639_vm3 = vcmp.gt.f32.partialorder %v569_v10, 0.0  ;;  %v1123_v13 = vld [vmem:[#allocation2 + $0x30] sm:$0xff] }
 0x134   : > { %v584_v16 = vadd.f32 %v1811_v15, %v2699_v0  ;;  %v578_v17 = vpop.f32.mrb[5].mxu0  ;;  %v672_v21 = vsel %vm640_vm4, %v574_v8, %v656_v12  ;;  %v1120_v8 = vld [vmem:[#allocation2 + $0x18] sm:$0xff]  ;;  %2120 = vmatprep.subr.bf16.mxu1 %v2119_v7 }
 0x135   : > { %v579_v18 = vadd.f32 %v2699_v0, %v578_v17  ;;  %v671_v19 = vsel %vm639_vm3, %v569_v10, %v655_v14  ;;  %v2123_v9 = vpack.c.bf16 %v1120_v8, %v1119_v6  ;;  %v1121_v10 = vld [vmem:[#allocation2 + $0x20] sm:$0xff]  ;;  %2122 = vmatpush3.bf16.msra.mxu1 %v2119_v7  ;;  %v1124_v14 = vld [vmem:[#allocation2 + $0x38] sm:$0xff]  ;;  %v1126_v17 = vld [vmem:[#allocation2 + $0x48] sm:$0xff] }
 0x136   : > { %v658_v20 = vmul.f32 0.05, %v584_v16  ;;  %1862 = vmatprep.mubr.f32.mxu1 %v671_v19  ;;  %vm642_vm6 = vcmp.gt.f32.partialorder %v584_v16, 0.0  ;;  %v2127_v12 = vpack.c.bf16 %v1122_v11, %v1121_v10  ;;  %v2131_v15 = vpack.c.bf16 %v1124_v14, %v1123_v13  ;;  %v1127_v19 = vld [vmem:[#allocation2 + $0x50] sm:$0xff] }
 0x137   : > { %v657_v22 = vmul.f32 0.05, %v579_v18  ;;  %v1814_v23 = vpop.f32.mrb[6].mxu0  ;;  %1863 = vmatmul.mubr.f32.gmra.mrb[2].mxu1 %v672_v21  ;;  %vm641_vm5 = vcmp.gt.f32.partialorder %v579_v18, 0.0  ;;  %2124 = vmatprep.subr.bf16.mxu1 %v2123_v9 }
 0x138   : > { %v594_v24 = vadd.f32 %v1814_v23, %v2699_v0  ;;  %v588_v25 = vpop.f32.mrb[7].mxu0  ;;  %v674_v29 = vsel %vm642_vm6, %v584_v16, %v658_v20  ;;  %v1125_v16 = vld [vmem:[#allocation2 + $0x40] sm:$0xff]  ;;  %v1128_v20 = vld [vmem:[#allocation2 + $0x58] sm:$0xff]  ;;  %v1130_v23 = vld [vmem:[#allocation2 + $0x68] sm:$0xff] }
 0x139   : > { %v589_v26 = vadd.f32 %v2699_v0, %v588_v25  ;;  %v673_v27 = vsel %vm641_vm5, %v579_v18, %v657_v22  ;;  %2126 = vmatpush3.bf16.msra.mxu1 %v2123_v9  ;;  %v2135_v18 = vpack.c.bf16 %v1126_v17, %v1125_v16  ;;  %v2139_v21 = vpack.c.bf16 %v1128_v20, %v1127_v19  ;;  %v1129_v22 = vld [vmem:[#allocation2 + $0x60] sm:$0xff] }
 0x13a   : > { %v660_v28 = vmul.f32 0.05, %v594_v24  ;;  %1865 = vmatprep.mubr.f32.mxu1 %v673_v27  ;;  %vm644_vm8 = vcmp.gt.f32.partialorder %v594_v24, 0.0  ;;  %2128 = vmatprep.subr.bf16.mxu1 %v2127_v12  ;;  %v2726_v25 = vld [vmem:[%s2866_s4] ss:$0 sm:$0xff] }
 0x13b   : > { %v659_v30 = vmul.f32 0.05, %v589_v26  ;;  %v1817_v31 = vpop.f32.mrb[8].mxu0  ;;  %1866 = vmatmul.mubr.f32.gmra.mrb[4].mxu1 %v674_v29  ;;  %vm643_vm7 = vcmp.gt.f32.partialorder %v589_v26, 0.0 }
 0x13c   : > { %v604_v32 = vadd.f32 %v1817_v31, %v2699_v0  ;;  %v598_v33 = vpop.f32.mrb[9].mxu0  ;;  %v676_v37 = vsel %vm644_vm8, %v594_v24, %v660_v28  ;;  %v2143_v24 = vpack.c.bf16 %v1130_v23, %v1129_v22 }
 0x13d   : > { %v599_v34 = vadd.f32 %v2699_v0, %v598_v33  ;;  %v675_v35 = vsel %vm643_vm7, %v589_v26, %v659_v30  ;;  %2130 = vmatpush3.bf16.msra.mxu1 %v2127_v12 }
 0x13e   : > { %v662_v36 = vmul.f32 0.05, %v604_v32  ;;  %1868 = vmatprep.mubr.f32.mxu1 %v675_v35  ;;  %vm646_vm10 = vcmp.gt.f32.partialorder %v604_v32, 0.0  ;;  %2132 = vmatprep.subr.bf16.mxu1 %v2131_v15 }
 0x13f   : > { %v661_v38 = vmul.f32 0.05, %v599_v34  ;;  %v1820_v39 = vpop.f32.mrb[10].mxu0  ;;  %1869 = vmatmul.mubr.f32.gmra.mrb[6].mxu1 %v676_v37  ;;  %vm645_vm9 = vcmp.gt.f32.partialorder %v599_v34, 0.0 }
 0x140   : > { %v614_v40 = vadd.f32 %v1820_v39, %v2699_v0  ;;  %v608_v41 = vpop.f32.mrb[11].mxu0  ;;  %v678_v45 = vsel %vm646_vm10, %v604_v32, %v662_v36 }
 0x141   : > { %v609_v42 = vadd.f32 %v2699_v0, %v608_v41  ;;  %v677_v43 = vsel %vm645_vm9, %v599_v34, %v661_v38  ;;  %2134 = vmatpush3.bf16.msra.mxu1 %v2131_v15 }
 0x142   : > { %v664_v44 = vmul.f32 0.05, %v614_v40  ;;  %1871 = vmatprep.mubr.f32.mxu1 %v677_v43  ;;  %vm648_vm12 = vcmp.gt.f32.partialorder %v614_v40, 0.0  ;;  %2136 = vmatprep.subr.bf16.mxu1 %v2135_v18 }
 0x143   : > { %v663_v46 = vmul.f32 0.05, %v609_v42  ;;  %v1823_v47 = vpop.f32.mrb[12].mxu0  ;;  %1872 = vmatmul.mubr.f32.gmra.mrb[8].mxu1 %v678_v45  ;;  %vm647_vm11 = vcmp.gt.f32.partialorder %v609_v42, 0.0 }
 0x144   : > { %v624_v48 = vadd.f32 %v1823_v47, %v2699_v0  ;;  %v618_v49 = vpop.f32.mrb[13].mxu0  ;;  %v680_v53 = vsel %vm648_vm12, %v614_v40, %v664_v44 }
 0x145   : > { %v619_v50 = vadd.f32 %v2699_v0, %v618_v49  ;;  %v679_v51 = vsel %vm647_vm11, %v609_v42, %v663_v46  ;;  %2138 = vmatpush3.bf16.msra.mxu1 %v2135_v18 }
 0x146   : > { %v666_v52 = vmul.f32 0.05, %v624_v48  ;;  %1874 = vmatprep.mubr.f32.mxu1 %v679_v51  ;;  %vm650_vm14 = vcmp.gt.f32.partialorder %v624_v48, 0.0  ;;  %2140 = vmatprep.subr.bf16.mxu1 %v2139_v21 }
 0x147   : > { %v665_v54 = vmul.f32 0.05, %v619_v50  ;;  %v1826_v55 = vpop.f32.mrb[14].mxu0  ;;  %1875 = vmatmul.mubr.f32.gmra.mrb[10].mxu1 %v680_v53  ;;  %vm649_vm13 = vcmp.gt.f32.partialorder %v619_v50, 0.0 }
 0x148   : > { %v634_v56 = vadd.f32 %v1826_v55, %v2699_v0  ;;  %v628_v57 = vpop.f32.mrb[15].mxu0  ;;  %v682_v61 = vsel %vm650_vm14, %v624_v48, %v666_v52 }
 0x149   : > { %v629_v58 = vadd.f32 %v2699_v0, %v628_v57  ;;  %v681_v59 = vsel %vm649_vm13, %v619_v50, %v665_v54  ;;  %v916_v0 = vld [vmem:[%s2867_s5 + $0x78] sm:$0xff]  ;;  %2142 = vmatpush3.bf16.msra.mxu1 %v2139_v21 }
 0x14a   : > { %v668_v60 = vmul.f32 0.05, %v634_v56  ;;  %1877 = vmatprep.mubr.f32.mxu1 %v681_v59  ;;  %vm652_vm0 = vcmp.gt.f32.partialorder %v634_v56, 0.0  ;;  %v2115_v3 = vpack.c.bf16 %v916_v0, %v915_v2  ;;  %2144 = vmatprep.subr.bf16.mxu1 %v2143_v24 }
 0x14b   : > { %v667_v62 = vmul.f32 0.05, %v629_v58  ;;  %1878 = vmatmul.mubr.f32.gmra.mrb[12].mxu1 %v682_v61  ;;  %vm651_vm15 = vcmp.gt.f32.partialorder %v629_v58, 0.0 }
 0x14c   : > { %v684_v1 = vsel %vm652_vm0, %v634_v56, %v668_v60  ;;  %2116 = vmatprep.subr.bf16.mxu0 %v2115_v3 }
 0x14d   : > { %v683_v63 = vsel %vm651_vm15, %v629_v58, %v667_v62  ;;  %2118 = vmatpush3.bf16.msra.mxu0 %v2115_v3  ;;  %2146 = vmatpush3.bf16.msra.mxu1 %v2143_v24 }
 0x14e   : > { %1880 = vmatprep.mubr.f32.mxu1 %v683_v63 }
 0x14f   : > { %1881 = vmatmul.mubr.f32.gmra.mrb[14].mxu1 %v684_v1 }
 0x206   : > { %v1861_v26 = vpop.f32.mrb[0].mxu1 }
 0x207   : > { %v780_v27 = vadd.f32 %v1861_v26, %v2726_v25  ;;  %v774_v28 = vpop.f32.mrb[1].mxu1 }
 0x208   : > { %v775_v29 = vadd.f32 %v2726_v25, %v774_v28  ;;  %v1132_v28 = vld [vmem:[#allocation2 + $0x78] sm:$0xff] }
 0x209   : > { %v870_v30 = vmul.f32 0.05, %v780_v27  ;;  %vm854_vm1 = vcmp.gt.f32.partialorder %v780_v27, 0.0 }
 0x20a   : > { %v869_v31 = vmul.f32 0.05, %v775_v29  ;;  %v1864_v32 = vpop.f32.mrb[2].mxu1  ;;  %vm853_vm2 = vcmp.gt.f32.partialorder %v775_v29, 0.0 }
 0x20b   : > { %v790_v33 = vadd.f32 %v1864_v32, %v2726_v25  ;;  %v784_v34 = vpop.f32.mrb[3].mxu1  ;;  %v886_v37 = vsel %vm854_vm1, %v780_v27, %v870_v30  ;;  %v1131_v27 = vld [vmem:[#allocation2 + $0x70] sm:$0xff]  ;;  %v1333_v30 = vld [vmem:[#allocation5] sm:$0xff] }
 0x20c   : > { %v785_v35 = vadd.f32 %v2726_v25, %v784_v34  ;;  %v885_v36 = vsel %vm853_vm2, %v775_v29, %v869_v31  ;;  %v2147_v29 = vpack.c.bf16 %v1132_v28, %v1131_v27  ;;  %v1334_v31 = vld [vmem:[#allocation5 + $0x8] sm:$0xff] }
 0x20d   : > { %v872_v38 = vmul.f32 0.05, %v790_v33  ;;  %1915 = vmatprep.mubr.f32.mxu0 %v885_v36  ;;  %vm856_vm4 = vcmp.gt.f32.partialorder %v790_v33, 0.0  ;;  %v2151_v32 = vpack.c.bf16 %v1334_v31, %v1333_v30  ;;  %v1338_v36 = vld [vmem:[#allocation5 + $0x28] sm:$0xff] }
 0x20e   : > { %v871_v39 = vmul.f32 0.05, %v785_v35  ;;  %v1867_v40 = vpop.f32.mrb[4].mxu1  ;;  %1916 = vmatmul.mubr.f32.vlgmr.msra.gmra.mrb[16].mxu0 %v886_v37  ;;  %vm855_vm3 = vcmp.gt.f32.partialorder %v785_v35, 0.0  ;;  %2148 = vmatprep.subr.bf16.mxu1 %v2147_v29 }
 0x20f   : > { %v800_v41 = vadd.f32 %v1867_v40, %v2726_v25  ;;  %v794_v42 = vpop.f32.mrb[5].mxu1  ;;  %v888_v46 = vsel %vm856_vm4, %v790_v33, %v872_v38  ;;  %2150 = vmatpush3.bf16.msra.mxu1 %v2147_v29  ;;  %v1336_v33 = vld [vmem:[#allocation5 + $0x18] sm:$0xff]  ;;  %2152 = vmatprep.subr.bf16.mxu0 %v2151_v32  ;;  %v1339_v38 = vld [vmem:[#allocation5 + $0x30] sm:$0xff] }
 0x210   : > { %v795_v43 = vadd.f32 %v2726_v25, %v794_v42  ;;  %v887_v44 = vsel %vm855_vm3, %v785_v35, %v871_v39  ;;  %v1337_v35 = vld [vmem:[#allocation5 + $0x20] sm:$0xff]  ;;  %2154 = vmatpush3.bf16.msra.mxu0 %v2151_v32  ;;  %v1340_v39 = vld [vmem:[#allocation5 + $0x38] sm:$0xff]  ;;  %v1342_v42 = vld [vmem:[#allocation5 + $0x48] sm:$0xff] }
 0x211   : > { %v874_v45 = vmul.f32 0.05, %v800_v41  ;;  %1918 = vmatprep.mubr.f32.mxu0 %v887_v44  ;;  %vm858_vm6 = vcmp.gt.f32.partialorder %v800_v41, 0.0  ;;  %v2159_v37 = vpack.c.bf16 %v1338_v36, %v1337_v35  ;;  %v2163_v40 = vpack.c.bf16 %v1340_v39, %v1339_v38  ;;  %v1343_v44 = vld [vmem:[#allocation5 + $0x50] sm:$0xff] }
 0x212   : > { %v873_v47 = vmul.f32 0.05, %v795_v43  ;;  %v1870_v48 = vpop.f32.mrb[6].mxu1  ;;  %1919 = vmatmul.mubr.f32.gmra.mrb[18].mxu0 %v888_v46  ;;  %vm857_vm5 = vcmp.gt.f32.partialorder %v795_v43, 0.0 }
 0x213   : > { %v810_v49 = vadd.f32 %v1870_v48, %v2726_v25  ;;  %v804_v50 = vpop.f32.mrb[7].mxu1  ;;  %v890_v54 = vsel %vm858_vm6, %v800_v41, %v874_v45  ;;  %v1341_v41 = vld [vmem:[#allocation5 + $0x40] sm:$0xff]  ;;  %v1344_v45 = vld [vmem:[#allocation5 + $0x58] sm:$0xff]  ;;  %v1346_v48 = vld [vmem:[#allocation5 + $0x68] sm:$0xff] }
 0x214   : > { %v805_v51 = vadd.f32 %v2726_v25, %v804_v50  ;;  %v889_v52 = vsel %vm857_vm5, %v795_v43, %v873_v47  ;;  %v2167_v43 = vpack.c.bf16 %v1342_v42, %v1341_v41  ;;  %v2171_v46 = vpack.c.bf16 %v1344_v45, %v1343_v44  ;;  %v1345_v47 = vld [vmem:[#allocation5 + $0x60] sm:$0xff] }
 0x215   : > { %v876_v53 = vmul.f32 0.05, %v810_v49  ;;  %1921 = vmatprep.mubr.f32.mxu0 %v889_v52  ;;  %vm860_vm8 = vcmp.gt.f32.partialorder %v810_v49, 0.0  ;;  %v2747_v50 = vld [vmem:[%s2868_s6] ss:$0 sm:$0xff] }
 0x216   : > { %v875_v55 = vmul.f32 0.05, %v805_v51  ;;  %v1873_v56 = vpop.f32.mrb[8].mxu1  ;;  %1922 = vmatmul.mubr.f32.gmra.mrb[20].mxu0 %v890_v54  ;;  %vm859_vm7 = vcmp.gt.f32.partialorder %v805_v51, 0.0 }
 0x217   : > { %v820_v57 = vadd.f32 %v1873_v56, %v2726_v25  ;;  %v814_v58 = vpop.f32.mrb[9].mxu1  ;;  %v892_v62 = vsel %vm860_vm8, %v810_v49, %v876_v53  ;;  %v2175_v49 = vpack.c.bf16 %v1346_v48, %v1345_v47 }
 0x218   : > { %v815_v59 = vadd.f32 %v2726_v25, %v814_v58  ;;  %v891_v60 = vsel %vm859_vm7, %v805_v51, %v875_v55 }
 0x219   : > { %v878_v61 = vmul.f32 0.05, %v820_v57  ;;  %1924 = vmatprep.mubr.f32.mxu0 %v891_v60  ;;  %vm862_vm10 = vcmp.gt.f32.partialorder %v820_v57, 0.0 }
 0x21a   : > { %v877_v63 = vmul.f32 0.05, %v815_v59  ;;  %v1876_v1 = vpop.f32.mrb[10].mxu1  ;;  %1925 = vmatmul.mubr.f32.gmra.mrb[22].mxu0 %v892_v62  ;;  %vm861_vm9 = vcmp.gt.f32.partialorder %v815_v59, 0.0 }
 0x21b   : > { %v830_v2 = vadd.f32 %v1876_v1, %v2726_v25  ;;  %v824_v0 = vpop.f32.mrb[11].mxu1  ;;  %v894_v6 = vsel %vm862_vm10, %v820_v57, %v878_v61 }
 0x21c   : > { %v825_v3 = vadd.f32 %v2726_v25, %v824_v0  ;;  %v893_v4 = vsel %vm861_vm9, %v815_v59, %v877_v63 }
 0x21d   : > { %v880_v5 = vmul.f32 0.05, %v830_v2  ;;  %1927 = vmatprep.mubr.f32.mxu0 %v893_v4  ;;  %vm864_vm12 = vcmp.gt.f32.partialorder %v830_v2, 0.0 }
 0x21e   : > { %v879_v7 = vmul.f32 0.05, %v825_v3  ;;  %v1879_v8 = vpop.f32.mrb[12].mxu1  ;;  %1928 = vmatmul.mubr.f32.gmra.mrb[24].mxu0 %v894_v6  ;;  %vm863_vm11 = vcmp.gt.f32.partialorder %v825_v3, 0.0 }
 0x21f   : > { %v840_v9 = vadd.f32 %v1879_v8, %v2726_v25  ;;  %v834_v10 = vpop.f32.mrb[13].mxu1  ;;  %v896_v14 = vsel %vm864_vm12, %v830_v2, %v880_v5 }
 0x220   : > { %v835_v11 = vadd.f32 %v2726_v25, %v834_v10  ;;  %v895_v12 = vsel %vm863_vm11, %v825_v3, %v879_v7 }
 0x221   : > { %v882_v13 = vmul.f32 0.05, %v840_v9  ;;  %1930 = vmatprep.mubr.f32.mxu0 %v895_v12  ;;  %vm866_vm14 = vcmp.gt.f32.partialorder %v840_v9, 0.0 }
 0x222   : > { %v881_v15 = vmul.f32 0.05, %v835_v11  ;;  %v1882_v16 = vpop.f32.mrb[14].mxu1  ;;  %1931 = vmatmul.mubr.f32.gmra.mrb[26].mxu0 %v896_v14  ;;  %vm865_vm13 = vcmp.gt.f32.partialorder %v835_v11, 0.0 }
 0x223   : > { %v850_v17 = vadd.f32 %v1882_v16, %v2726_v25  ;;  %v844_v18 = vpop.f32.mrb[15].mxu1  ;;  %v898_v22 = vsel %vm866_vm14, %v840_v9, %v882_v13 }
 0x224   : > { %v845_v19 = vadd.f32 %v2726_v25, %v844_v18  ;;  %v897_v20 = vsel %vm865_vm13, %v835_v11, %v881_v15  ;;  %v1335_v25 = vld [vmem:[#allocation5 + $0x10] sm:$0xff] }
 0x225   : > { %v884_v21 = vmul.f32 0.05, %v850_v17  ;;  %1933 = vmatprep.mubr.f32.mxu0 %v897_v20  ;;  %vm868_vm0 = vcmp.gt.f32.partialorder %v850_v17, 0.0  ;;  %v2155_v34 = vpack.c.bf16 %v1336_v33, %v1335_v25 }
 0x226   : > { %v883_v23 = vmul.f32 0.05, %v845_v19  ;;  %1934 = vmatmul.mubr.f32.gmra.mrb[28].mxu0 %v898_v22  ;;  %vm867_vm15 = vcmp.gt.f32.partialorder %v845_v19, 0.0 }
 0x227   : > { %v900_v26 = vsel %vm868_vm0, %v850_v17, %v884_v21  ;;  %2156 = vmatprep.subr.bf16.mxu0 %v2155_v34 }
 0x228   : > { %v899_v24 = vsel %vm867_vm15, %v845_v19, %v883_v23  ;;  %2158 = vmatpush3.bf16.msra.mxu0 %v2155_v34 }
 0x229   : > { %1936 = vmatprep.mubr.f32.mxu0 %v899_v24  ;;  %2160 = vmatprep.subr.bf16.mxu0 %v2159_v37 }
 0x22a   : > { %1937 = vmatmul.mubr.f32.gmra.mrb[30].mxu0 %v900_v26 }
 0x22c   : > { %2162 = vmatpush3.bf16.msra.mxu0 %v2159_v37 }
 0x22d   : > { %2164 = vmatprep.subr.bf16.mxu0 %v2163_v40 }
 0x230   : > { %2166 = vmatpush3.bf16.msra.mxu0 %v2163_v40 }
 0x231   : > { %2168 = vmatprep.subr.bf16.mxu0 %v2167_v43 }
 0x234   : > { %2170 = vmatpush3.bf16.msra.mxu0 %v2167_v43 }
 0x235   : > { %2172 = vmatprep.subr.bf16.mxu0 %v2171_v46 }
 0x238   : > { %2174 = vmatpush3.bf16.msra.mxu0 %v2171_v46 }
 0x239   : > { %2176 = vmatprep.subr.bf16.mxu0 %v2175_v49 }
 0x23c   : > { %2178 = vmatpush3.bf16.msra.mxu0 %v2175_v49 }
 0x2e1   : > { %v1917_v51 = vpop.f32.mrb[16].mxu0 }
 0x2e2   : > { %v996_v52 = vadd.f32 %v1917_v51, %v2747_v50  ;;  %v990_v53 = vpop.f32.mrb[17].mxu0 }
 0x2e3   : > { %v991_v54 = vadd.f32 %v2747_v50, %v990_v53  ;;  %v1348_v53 = vld [vmem:[#allocation5 + $0x78] sm:$0xff] }
 0x2e4   : > { %v1086_v55 = vmul.f32 0.05, %v996_v52  ;;  %vm1070_vm1 = vcmp.gt.f32.partialorder %v996_v52, 0.0 }
 0x2e5   : > { %v1085_v56 = vmul.f32 0.05, %v991_v54  ;;  %v1920_v57 = vpop.f32.mrb[18].mxu0  ;;  %vm1069_vm2 = vcmp.gt.f32.partialorder %v991_v54, 0.0 }
 0x2e6   : > { %v1006_v58 = vadd.f32 %v1920_v57, %v2747_v50  ;;  %v1000_v59 = vpop.f32.mrb[19].mxu0  ;;  %v1102_v62 = vsel %vm1070_vm1, %v996_v52, %v1086_v55  ;;  %v1347_v52 = vld [vmem:[#allocation5 + $0x70] sm:$0xff] }
 0x2e7   : > { %v1001_v60 = vadd.f32 %v2747_v50, %v1000_v59  ;;  %v1101_v61 = vsel %vm1069_vm2, %v991_v54, %v1085_v56  ;;  %v2179_v54 = vpack.c.bf16 %v1348_v53, %v1347_v52 }
 0x2e8   : > { %v1088_v63 = vmul.f32 0.05, %v1006_v58  ;;  %1971 = vmatprep.mubr.f32.mxu1 %v1101_v61  ;;  %vm1072_vm4 = vcmp.gt.f32.partialorder %v1006_v58, 0.0 }
 0x2e9   : > { %v1087_v1 = vmul.f32 0.05, %v1001_v60  ;;  %v1923_v2 = vpop.f32.mrb[20].mxu0  ;;  %1972 = vmatmul.mubr.f32.vlgmr.msra.gmra.mrb[16].mxu1 %v1102_v62  ;;  %vm1071_vm3 = vcmp.gt.f32.partialorder %v1001_v60, 0.0  ;;  %2180 = vmatprep.subr.bf16.mxu0 %v2179_v54 }
 0x2ea   : > { %v1016_v0 = vadd.f32 %v1923_v2, %v2747_v50  ;;  %v1010_v3 = vpop.f32.mrb[21].mxu0  ;;  %v1104_v7 = vsel %vm1072_vm4, %v1006_v58, %v1088_v63  ;;  %2182 = vmatpush3.bf16.msra.mxu0 %v2179_v54 }
 0x2eb   : > { %v1011_v4 = vadd.f32 %v2747_v50, %v1010_v3  ;;  %v1103_v5 = vsel %vm1071_vm3, %v1001_v60, %v1087_v1 }
 0x2ec   : > { %v1090_v6 = vmul.f32 0.05, %v1016_v0  ;;  %1974 = vmatprep.mubr.f32.mxu1 %v1103_v5  ;;  %vm1074_vm6 = vcmp.gt.f32.partialorder %v1016_v0, 0.0 }
 0x2ed   : > { %v1089_v8 = vmul.f32 0.05, %v1011_v4  ;;  %v1926_v9 = vpop.f32.mrb[22].mxu0  ;;  %1975 = vmatmul.mubr.f32.gmra.mrb[18].mxu1 %v1104_v7  ;;  %vm1073_vm5 = vcmp.gt.f32.partialorder %v1011_v4, 0.0 }
 0x2ee   : > { %v1026_v10 = vadd.f32 %v1926_v9, %v2747_v50  ;;  %v1020_v11 = vpop.f32.mrb[23].mxu0  ;;  %v1106_v15 = vsel %vm1074_vm6, %v1016_v0, %v1090_v6 }
 0x2ef   : > { %v1021_v12 = vadd.f32 %v2747_v50, %v1020_v11  ;;  %v1105_v13 = vsel %vm1073_vm5, %v1011_v4, %v1089_v8 }
 0x2f0   : > { %v1092_v14 = vmul.f32 0.05, %v1026_v10  ;;  %1977 = vmatprep.mubr.f32.mxu1 %v1105_v13  ;;  %vm1076_vm8 = vcmp.gt.f32.partialorder %v1026_v10, 0.0 }
 0x2f1   : > { %v1091_v16 = vmul.f32 0.05, %v1021_v12  ;;  %v1929_v17 = vpop.f32.mrb[24].mxu0  ;;  %1978 = vmatmul.mubr.f32.gmra.mrb[20].mxu1 %v1106_v15  ;;  %vm1075_vm7 = vcmp.gt.f32.partialorder %v1021_v12, 0.0 }
 0x2f2   : > { %v1036_v18 = vadd.f32 %v1929_v17, %v2747_v50  ;;  %v1030_v19 = vpop.f32.mrb[25].mxu0  ;;  %v1108_v23 = vsel %vm1076_vm8, %v1026_v10, %v1092_v14 }
 0x2f3   : > { %v1031_v20 = vadd.f32 %v2747_v50, %v1030_v19  ;;  %v1107_v21 = vsel %vm1075_vm7, %v1021_v12, %v1091_v16 }
 0x2f4   : > { %v1094_v22 = vmul.f32 0.05, %v1036_v18  ;;  %1980 = vmatprep.mubr.f32.mxu1 %v1107_v21  ;;  %vm1078_vm10 = vcmp.gt.f32.partialorder %v1036_v18, 0.0 }
 0x2f5   : > { %v1093_v24 = vmul.f32 0.05, %v1031_v20  ;;  %v1932_v26 = vpop.f32.mrb[26].mxu0  ;;  %1981 = vmatmul.mubr.f32.gmra.mrb[22].mxu1 %v1108_v23  ;;  %vm1077_vm9 = vcmp.gt.f32.partialorder %v1031_v20, 0.0 }
 0x2f6   : > { %v1046_v27 = vadd.f32 %v1932_v26, %v2747_v50  ;;  %v1040_v28 = vpop.f32.mrb[27].mxu0  ;;  %v1110_v25 = vsel %vm1078_vm10, %v1036_v18, %v1094_v22 }
 0x2f7   : > { %v1041_v29 = vadd.f32 %v2747_v50, %v1040_v28  ;;  %v1109_v30 = vsel %vm1077_vm9, %v1031_v20, %v1093_v24 }
 0x2f8   : > { %v1096_v31 = vmul.f32 0.05, %v1046_v27  ;;  %1983 = vmatprep.mubr.f32.mxu1 %v1109_v30  ;;  %vm1080_vm12 = vcmp.gt.f32.partialorder %v1046_v27, 0.0 }
 0x2f9   : > { %v1095_v32 = vmul.f32 0.05, %v1041_v29  ;;  %v1935_v33 = vpop.f32.mrb[28].mxu0  ;;  %1984 = vmatmul.mubr.f32.gmra.mrb[24].mxu1 %v1110_v25  ;;  %vm1079_vm11 = vcmp.gt.f32.partialorder %v1041_v29, 0.0 }
 0x2fa   : > { %v1056_v34 = vadd.f32 %v1935_v33, %v2747_v50  ;;  %v1050_v35 = vpop.f32.mrb[29].mxu0  ;;  %v1112_v39 = vsel %vm1080_vm12, %v1046_v27, %v1096_v31 }
 0x2fb   : > { %v1051_v36 = vadd.f32 %v2747_v50, %v1050_v35  ;;  %v1111_v37 = vsel %vm1079_vm11, %v1041_v29, %v1095_v32 }
 0x2fc   : > { %v1098_v38 = vmul.f32 0.05, %v1056_v34  ;;  %1986 = vmatprep.mubr.f32.mxu1 %v1111_v37  ;;  %vm1082_vm14 = vcmp.gt.f32.partialorder %v1056_v34, 0.0 }
 0x2fd   : > { %v1097_v40 = vmul.f32 0.05, %v1051_v36  ;;  %v1938_v41 = vpop.f32.mrb[30].mxu0  ;;  %1987 = vmatmul.mubr.f32.gmra.mrb[26].mxu1 %v1112_v39  ;;  %vm1081_vm13 = vcmp.gt.f32.partialorder %v1051_v36, 0.0 }
 0x2fe   : > { %v1066_v42 = vadd.f32 %v1938_v41, %v2747_v50  ;;  %v1060_v43 = vpop.f32.mrb[31].mxu0  ;;  %v1114_v47 = vsel %vm1082_vm14, %v1056_v34, %v1098_v38 }
 0x2ff   : > { %v1061_v44 = vadd.f32 %v2747_v50, %v1060_v43  ;;  %v1113_v45 = vsel %vm1081_vm13, %v1051_v36, %v1097_v40  ;;  %v2768_v50 = vld [vmem:[%s2870_s8] ss:$0 sm:$0xff] }
 0x300   : > { %v1100_v46 = vmul.f32 0.05, %v1066_v42  ;;  %1989 = vmatprep.mubr.f32.mxu1 %v1113_v45  ;;  %vm1084_vm0 = vcmp.gt.f32.partialorder %v1066_v42, 0.0 }
 0x301   : > { %v1099_v48 = vmul.f32 0.05, %v1061_v44  ;;  %1990 = vmatmul.mubr.f32.gmra.mrb[28].mxu1 %v1114_v47  ;;  %vm1083_vm15 = vcmp.gt.f32.partialorder %v1061_v44, 0.0 }
 0x302   : > { %v1116_v51 = vsel %vm1084_vm0, %v1066_v42, %v1100_v46 }
 0x303   : > { %v1115_v49 = vsel %vm1083_vm15, %v1061_v44, %v1099_v48 }
 0x304   : > { %1992 = vmatprep.mubr.f32.mxu1 %v1115_v49 }
 0x305   : > { %1993 = vmatmul.mubr.f32.gmra.mrb[30].mxu1 %v1116_v51 }
 0x3bc   : > { %v1973_v55 = vpop.f32.mrb[16].mxu1 }
 0x3bd   : > { %v1212_v56 = vadd.f32 %v1973_v55, %v2768_v50  ;;  %v1206_v57 = vpop.f32.mrb[17].mxu1 }
 0x3be   : > { %v1207_v58 = vadd.f32 %v2768_v50, %v1206_v57 }
 0x3bf   : > { %v1302_v59 = vmul.f32 0.05, %v1212_v56  ;;  %vm1286_vm1 = vcmp.gt.f32.partialorder %v1212_v56, 0.0 }
 0x3c0   : > { %v1301_v60 = vmul.f32 0.05, %v1207_v58  ;;  %v1976_v61 = vpop.f32.mrb[18].mxu1  ;;  %vm1285_vm2 = vcmp.gt.f32.partialorder %v1207_v58, 0.0 }
 0x3c1   : > { %v1222_v62 = vadd.f32 %v1976_v61, %v2768_v50  ;;  %v1216_v63 = vpop.f32.mrb[19].mxu1  ;;  %v1318_v0 = vsel %vm1286_vm1, %v1212_v56, %v1302_v59  ;;  %v1646_v56 = vld [vmem:[%s2872_s10] ss:$0 sm:$0xff] }
 0x3c2   : > { %v1217_v1 = vadd.f32 %v2768_v50, %v1216_v63  ;;  %v1317_v2 = vsel %vm1285_vm2, %v1207_v58, %v1301_v60 }
 0x3c3   : > { %v1304_v3 = vmul.f32 0.05, %v1222_v62  ;;  %2027 = vmatprep.mubr.f32.mxu0 %v1317_v2  ;;  %vm1288_vm4 = vcmp.gt.f32.partialorder %v1222_v62, 0.0 }
 0x3c4   : > { %v1303_v4 = vmul.f32 0.05, %v1217_v1  ;;  %v1979_v5 = vpop.f32.mrb[20].mxu1  ;;  %2028 = vmatmul.mubr.f32.vlgmr.msra.gmra.mrb[32].mxu0 %v1318_v0  ;;  %vm1287_vm3 = vcmp.gt.f32.partialorder %v1217_v1, 0.0 }
 0x3c5   : > { %v1232_v6 = vadd.f32 %v1979_v5, %v2768_v50  ;;  %v1226_v7 = vpop.f32.mrb[21].mxu1  ;;  %v1320_v11 = vsel %vm1288_vm4, %v1222_v62, %v1304_v3 }
 0x3c6   : > { %v1227_v8 = vadd.f32 %v2768_v50, %v1226_v7  ;;  %v1319_v9 = vsel %vm1287_vm3, %v1217_v1, %v1303_v4 }
 0x3c7   : > { %v1306_v10 = vmul.f32 0.05, %v1232_v6  ;;  %2030 = vmatprep.mubr.f32.mxu0 %v1319_v9  ;;  %vm1290_vm6 = vcmp.gt.f32.partialorder %v1232_v6, 0.0 }
 0x3c8   : > { %v1305_v12 = vmul.f32 0.05, %v1227_v8  ;;  %v1982_v13 = vpop.f32.mrb[22].mxu1  ;;  %2031 = vmatmul.mubr.f32.gmra.mrb[34].mxu0 %v1320_v11  ;;  %vm1289_vm5 = vcmp.gt.f32.partialorder %v1227_v8, 0.0 }
 0x3c9   : > { %v1242_v14 = vadd.f32 %v1982_v13, %v2768_v50  ;;  %v1236_v15 = vpop.f32.mrb[23].mxu1  ;;  %v1322_v19 = vsel %vm1290_vm6, %v1232_v6, %v1306_v10 }
 0x3ca   : > { %v1237_v16 = vadd.f32 %v2768_v50, %v1236_v15  ;;  %v1321_v17 = vsel %vm1289_vm5, %v1227_v8, %v1305_v12 }
 0x3cb   : > { %v1308_v18 = vmul.f32 0.05, %v1242_v14  ;;  %2033 = vmatprep.mubr.f32.mxu0 %v1321_v17  ;;  %vm1292_vm8 = vcmp.gt.f32.partialorder %v1242_v14, 0.0 }
 0x3cc   : > { %v1307_v20 = vmul.f32 0.05, %v1237_v16  ;;  %v1985_v21 = vpop.f32.mrb[24].mxu1  ;;  %2034 = vmatmul.mubr.f32.gmra.mrb[36].mxu0 %v1322_v19  ;;  %vm1291_vm7 = vcmp.gt.f32.partialorder %v1237_v16, 0.0 }
 0x3cd   : > { %v1252_v22 = vadd.f32 %v1985_v21, %v2768_v50  ;;  %v1246_v23 = vpop.f32.mrb[25].mxu1  ;;  %v1324_v28 = vsel %vm1292_vm8, %v1242_v14, %v1308_v18 }
 0x3ce   : > { %v1247_v24 = vadd.f32 %v2768_v50, %v1246_v23  ;;  %v1323_v26 = vsel %vm1291_vm7, %v1237_v16, %v1307_v20 }
 0x3cf   : > { %v1310_v27 = vmul.f32 0.05, %v1252_v22  ;;  %2036 = vmatprep.mubr.f32.mxu0 %v1323_v26  ;;  %vm1294_vm10 = vcmp.gt.f32.partialorder %v1252_v22, 0.0 }
 0x3d0   : > { %v1309_v29 = vmul.f32 0.05, %v1247_v24  ;;  %v1988_v30 = vpop.f32.mrb[26].mxu1  ;;  %2037 = vmatmul.mubr.f32.gmra.mrb[38].mxu0 %v1324_v28  ;;  %vm1293_vm9 = vcmp.gt.f32.partialorder %v1247_v24, 0.0 }
 0x3d1   : > { %v1262_v31 = vadd.f32 %v1988_v30, %v2768_v50  ;;  %v1256_v25 = vpop.f32.mrb[27].mxu1  ;;  %v1326_v35 = vsel %vm1294_vm10, %v1252_v22, %v1310_v27 }
 0x3d2   : > { %v1257_v32 = vadd.f32 %v2768_v50, %v1256_v25  ;;  %v1325_v33 = vsel %vm1293_vm9, %v1247_v24, %v1309_v29 }
 0x3d3   : > { %v1312_v34 = vmul.f32 0.05, %v1262_v31  ;;  %2039 = vmatprep.mubr.f32.mxu0 %v1325_v33  ;;  %vm1296_vm12 = vcmp.gt.f32.partialorder %v1262_v31, 0.0 }
 0x3d4   : > { %v1311_v36 = vmul.f32 0.05, %v1257_v32  ;;  %v1991_v37 = vpop.f32.mrb[28].mxu1  ;;  %2040 = vmatmul.mubr.f32.gmra.mrb[40].mxu0 %v1326_v35  ;;  %vm1295_vm11 = vcmp.gt.f32.partialorder %v1257_v32, 0.0 }
 0x3d5   : > { %v1272_v38 = vadd.f32 %v1991_v37, %v2768_v50  ;;  %v1266_v39 = vpop.f32.mrb[29].mxu1  ;;  %v1328_v43 = vsel %vm1296_vm12, %v1262_v31, %v1312_v34 }
 0x3d6   : > { %v1267_v40 = vadd.f32 %v2768_v50, %v1266_v39  ;;  %v1327_v41 = vsel %vm1295_vm11, %v1257_v32, %v1311_v36 }
 0x3d7   : > { %v1314_v42 = vmul.f32 0.05, %v1272_v38  ;;  %2042 = vmatprep.mubr.f32.mxu0 %v1327_v41  ;;  %vm1298_vm14 = vcmp.gt.f32.partialorder %v1272_v38, 0.0 }
 0x3d8   : > { %v1313_v44 = vmul.f32 0.05, %v1267_v40  ;;  %v1994_v45 = vpop.f32.mrb[30].mxu1  ;;  %2043 = vmatmul.mubr.f32.gmra.mrb[42].mxu0 %v1328_v43  ;;  %vm1297_vm13 = vcmp.gt.f32.partialorder %v1267_v40, 0.0 }
 0x3d9   : > { %v1282_v46 = vadd.f32 %v1994_v45, %v2768_v50  ;;  %v1276_v47 = vpop.f32.mrb[31].mxu1  ;;  %v1330_v52 = vsel %vm1298_vm14, %v1272_v38, %v1314_v42 }
 0x3da   : > { %v1277_v48 = vadd.f32 %v2768_v50, %v1276_v47  ;;  %v1329_v49 = vsel %vm1297_vm13, %v1267_v40, %v1313_v44 }
 0x3db   : > { %v1316_v51 = vmul.f32 0.05, %v1282_v46  ;;  %2045 = vmatprep.mubr.f32.mxu0 %v1329_v49  ;;  %vm1300_vm0 = vcmp.gt.f32.partialorder %v1282_v46, 0.0 }
 0x3dc   : > { %v1315_v53 = vmul.f32 0.05, %v1277_v48  ;;  %2046 = vmatmul.mubr.f32.gmra.mrb[44].mxu0 %v1330_v52  ;;  %vm1299_vm15 = vcmp.gt.f32.partialorder %v1277_v48, 0.0 }
 0x3dd   : > { %v1332_v55 = vsel %vm1300_vm0, %v1282_v46, %v1316_v51 }
 0x3de   : > { %v1331_v54 = vsel %vm1299_vm15, %v1277_v48, %v1315_v53 }
 0x3df   : > { %2048 = vmatprep.mubr.f32.mxu0 %v1331_v54 }
 0x3e0   : > { %2049 = vmatmul.mubr.f32.gmra.mrb[46].mxu0 %v1332_v55 }
 0x497   : > { %v2029_v50 = vpop.f32.mrb[32].mxu0 }
 0x498   : > { %v1428_v57 = vadd.f32 %v2029_v50, %v1646_v56  ;;  %v1422_v58 = vpop.f32.mrb[33].mxu0 }
 0x499   : > { %v1423_v59 = vadd.f32 %v1646_v56, %v1422_v58 }
 0x49a   : > { %1502 = vst [vmem:[%s2792_s12 + $0x8] sm:$0xff] %v1428_v57 }
 0x49b   : > { %1501 = vst [vmem:[%s2792_s12] sm:$0xff] %v1423_v59  ;;  %v2032_v60 = vpop.f32.mrb[34].mxu0 }
 0x49c   : > { %v1438_v61 = vadd.f32 %v2032_v60, %v1646_v56  ;;  %v1432_v62 = vpop.f32.mrb[35].mxu0 }
 0x49d   : > { %v1433_v63 = vadd.f32 %v1646_v56, %v1432_v62 }
 0x49e   : > { %1504 = vst [vmem:[%s2792_s12 + $0x18] sm:$0xff] %v1438_v61 }
 0x49f   : > { %1503 = vst [vmem:[%s2792_s12 + $0x10] sm:$0xff] %v1433_v63  ;;  %v2035_v1 = vpop.f32.mrb[36].mxu0 }
 0x4a0   : > { %v1448_v2 = vadd.f32 %v2035_v1, %v1646_v56  ;;  %v1442_v0 = vpop.f32.mrb[37].mxu0 }
 0x4a1   : > { %v1443_v3 = vadd.f32 %v1646_v56, %v1442_v0 }
 0x4a2   : > { %1506 = vst [vmem:[%s2792_s12 + $0x28] sm:$0xff] %v1448_v2 }
 0x4a3   : > { %1505 = vst [vmem:[%s2792_s12 + $0x20] sm:$0xff] %v1443_v3  ;;  %v2038_v4 = vpop.f32.mrb[38].mxu0 }
 0x4a4   : > { %v1458_v5 = vadd.f32 %v2038_v4, %v1646_v56  ;;  %v1452_v6 = vpop.f32.mrb[39].mxu0 }
 0x4a5   : > { %v1453_v7 = vadd.f32 %v1646_v56, %v1452_v6 }
 0x4a6   : > { %1508 = vst [vmem:[%s2792_s12 + $0x38] sm:$0xff] %v1458_v5 }
 0x4a7   : > { %1507 = vst [vmem:[%s2792_s12 + $0x30] sm:$0xff] %v1453_v7  ;;  %v2041_v8 = vpop.f32.mrb[40].mxu0 }
 0x4a8   : > { %v1468_v9 = vadd.f32 %v2041_v8, %v1646_v56  ;;  %v1462_v10 = vpop.f32.mrb[41].mxu0 }
 0x4a9   : > { %v1463_v11 = vadd.f32 %v1646_v56, %v1462_v10 }
 0x4aa   : > { %1510 = vst [vmem:[%s2792_s12 + $0x48] sm:$0xff] %v1468_v9 }
 0x4ab   : > { %1509 = vst [vmem:[%s2792_s12 + $0x40] sm:$0xff] %v1463_v11  ;;  %v2044_v12 = vpop.f32.mrb[42].mxu0 }
 0x4ac   : > { %v1478_v13 = vadd.f32 %v2044_v12, %v1646_v56  ;;  %v1472_v14 = vpop.f32.mrb[43].mxu0 }
 0x4ad   : > { %v1473_v15 = vadd.f32 %v1646_v56, %v1472_v14 }
 0x4ae   : > { %1512 = vst [vmem:[%s2792_s12 + $0x58] sm:$0xff] %v1478_v13 }
 0x4af   : > { %1511 = vst [vmem:[%s2792_s12 + $0x50] sm:$0xff] %v1473_v15  ;;  %v2047_v16 = vpop.f32.mrb[44].mxu0 }
 0x4b0   : > { %v1488_v17 = vadd.f32 %v2047_v16, %v1646_v56  ;;  %v1482_v18 = vpop.f32.mrb[45].mxu0 }
 0x4b1   : > { %v1483_v19 = vadd.f32 %v1646_v56, %v1482_v18 }
 0x4b2   : > { %1514 = vst [vmem:[%s2792_s12 + $0x68] sm:$0xff] %v1488_v17 }
 0x4b3   : > { %1513 = vst [vmem:[%s2792_s12 + $0x60] sm:$0xff] %v1483_v19  ;;  %v2050_v20 = vpop.f32.mrb[46].mxu0 }
 0x4b4   : > { %v1498_v21 = vadd.f32 %v2050_v20, %v1646_v56  ;;  %v1492_v22 = vpop.f32.mrb[47].mxu0 }
 0x4b5   : > { %v1493_v23 = vadd.f32 %v1646_v56, %v1492_v22 }
 0x4b6   : > { %1516 = vst [vmem:[%s2792_s12 + $0x78] sm:$0xff] %v1498_v21 }
 0x4b7   : > { %1515 = vst [vmem:[%s2792_s12 + $0x70] sm:$0xff] %v1493_v23 }
 0x4b8   : > { %2316 = shalt.err (!%p2313_p11)
}
 0x4b9   : > { %s2317_s26 = scalar_lea.hbm %s2813_s13, 2048  ;;  %s2321_s30 = scalar_lea.hbm %s2873_s11, 4096 }
 0x4ba   : > { %p2318_p13 = scmp.ne.s32.totalorder %s2813_s13, %s2317_s26  ;;  %p2322_p6 = scmp.lt.u32.totalorder %s2813_s13, %s2873_s11 }
 0x4bb   : > { %p2323_p9 = scmp.lt.u32.totalorder %s2321_s30, %s2317_s26  ;;  %p2325_p12 = scmp.lt.u32.totalorder %s2317_s26, %s2813_s13 }
 0x4bc   : > { %p2319_p5 = pnand %p2318_p13, %p2896_p1 }
 0x4bd   : > { %p2324_p10 = por %p2323_p9, %p2322_p6 }
 0x4be   : > { %p2320_p0 = pneg %p2319_p5 }
 0x4bf   : > { %p2326_p2 = por %p2325_p12, %p2324_p10 }
 0x4c1   : > { %p2327_p3 = pnand %p2326_p2, %p2320_p0 }
 0x4c3   : > { %2330 = shalt.err (!%p2327_p3)
}
 0x4c4   : > { %s2380_s16 = smov 128   ;;  %s2381_s23 = smov 8  }
 0x4c5   : > { %2191 = dma.vmem_to_hbm [thread:$0]  (%p2896_p1), %s2815_s17, 2048, %s2813_s13, %s2821_s21, %s2380_s16, %s2380_s16, %s2381_s23  }
 0x4c6 PF: > { %s2897_s28 = sld [smem:[#allocation11_spill]]  ;;  %s2898_s29 = sld [smem:[#allocation15_spill]] }
 0x4c7   : > { %p2208_p4 = scmp.ge.s32.totalorder %s2373_s20, 2 }
 0x4cc   : > { %s1546_s15 = sand.u32 1, %s2897_s28   ;;  %p2899_p7 = scmp.ne.s32.totalorder %s2898_s29, 0 }
 0x4cd   : > { %s1547_s22 = scalar_lea.sflag [#allocation4], %s1546_s15 }
 0x4ce   : > { %p2201_p8 = pnand %p2208_p4, %p2899_p7 }
 0x4d0   : > { %2356 = dma.done.wait (!%p2201_p8), %s1547_s22, 2048  }
 0x4d1   : > { %2358 = vsyncadd (!%p2201_p8), %s1547_s22, 4294965248  ;;  %s2900_s20 = sld [smem:[#allocation13_spill]]  ;;  %s2901_s19 = sld [smem:[#allocation12_spill]] }
 0x4d2   : > { %s2902_s26 = sld [smem:[#allocation14_spill]]  ;;  %s2903_s17 = smov %s2365_s18 }
 0x4d7   : > { %p23_p11 = scmp.ge.s32.totalorder %s2900_s20, 4   ;;  %s2904_s18 = smov %s2901_s19 }
 0x4d8   : > { %s2905_s19 = smov %s2902_s26 }
 0x4d9   :  { %25 = sbr.rel (!%p23_p11) target bundleno = 5 (0x5), region = 108 }
 0x4e0   :  { %1552 = vsyncpa [#allocation3], 1 }
 0x4e1   :  { %1554 = vsyncpa [#allocation3 + $0x1], 1 }
 0x4e2   :  { %1555 = vsyncpa [#allocation6], 1 }
 0x4e3   :  { %1556 = vsyncpa [#allocation4], 1 }
 0x4e4   :  { %1558 = vsyncpa [#allocation4 + $0x1], 1 }

</bundles_post_ra>
